<compile_context>
chip_gen: v5e
topology: v5e:2x2
jax: 0.10.0
libtpu: 0.0.40
codegen_flags: <defaults>
</compile_context>

<pallas_src>
import functools

import jax
import jax.numpy as jnp
from jax.experimental import pallas as pl
from jax.experimental.pallas import tpu as pltpu


# ----------------------------------------------------------------------------
# Pallas kernels
# ----------------------------------------------------------------------------
def _gemm_bn_relu_kernel(wt_ref, p_ref, g_ref, beta_ref, o_ref, *, count, eps):
    # wt:(Cout, K) conv weight, p:(K, M) im2col patches (M = N*OH*OW on lanes).
    y = jnp.dot(wt_ref[...], p_ref[...], preferred_element_type=jnp.float32)
    # Training-mode BatchNorm2d: per-channel (= per-row) batch statistics,
    # biased variance, fused with ReLU.
    mean = jnp.sum(y, axis=1, keepdims=True) * (1.0 / count)          # (Cout, 1)
    var = jnp.sum(y * y, axis=1, keepdims=True) * (1.0 / count) - mean * mean
    inv = jax.lax.rsqrt(var + eps)
    o_ref[...] = jnp.maximum((y - mean) * (inv * g_ref[...]) + beta_ref[...], 0.0)


def pallas_convT_bn_relu(wt, patches_t, gamma, beta, eps=1e-5):
    """(Cout,K) @ (K,M) with fused training-mode BatchNorm2d + ReLU epilogue.

    The whole (Cout, M) result lives in one VMEM block (Cout<=32, M<=392 here)
    so the batch stats over M are computed in the same kernel: no extra
    pallas_call, no HBM transposes, lane-dense (M on lanes) output stores.
    """
    C, K = wt.shape
    M = patches_t.shape[1]
    return pl.pallas_call(
        functools.partial(_gemm_bn_relu_kernel, count=float(M), eps=eps),
        out_shape=jax.ShapeDtypeStruct((C, M), jnp.float32),
        grid_spec=pltpu.PrefetchScalarGridSpec(
            num_scalar_prefetch=0,
            grid=(1,),
            in_specs=[
                pl.BlockSpec((C, K), lambda i: (0, 0)),
                pl.BlockSpec((K, M), lambda i: (0, 0)),
                pl.BlockSpec((C, 1), lambda i: (0, 0)),
                pl.BlockSpec((C, 1), lambda i: (0, 0)),
            ],
            out_specs=pl.BlockSpec((C, M), lambda i: (0, 0)),
        ),
        compiler_params=pltpu.CompilerParams(dimension_semantics=("arbitrary",)),
    )(wt, patches_t, gamma, beta)


def _gemm_tanh_kernel(wt_ref, p_ref, o_ref):
    o_ref[...] = jnp.tanh(
        jnp.dot(wt_ref[...], p_ref[...], preferred_element_type=jnp.float32))


def pallas_convT_tanh(wt, patches_t):
    """(Cout,K) @ (K,M) followed by tanh; single M block (layer is launch/store
    bound, so no grid split), lane-dense output (M = N*28*28 on lanes)."""
    C, K = wt.shape
    M = patches_t.shape[1]
    return pl.pallas_call(
        _gemm_tanh_kernel,
        out_shape=jax.ShapeDtypeStruct((C, M), jnp.float32),
        grid_spec=pltpu.PrefetchScalarGridSpec(
            num_scalar_prefetch=0,
            grid=(1,),
            in_specs=[
                pl.BlockSpec((C, K), lambda i: (0, 0)),
                pl.BlockSpec((K, M), lambda i: (0, 0)),
            ],
            out_specs=pl.BlockSpec((C, M), lambda i: (0, 0)),
        ),
        compiler_params=pltpu.CompilerParams(dimension_semantics=("arbitrary",)),
    )(wt, patches_t)


# ----------------------------------------------------------------------------
# ConvTranspose2d glue: one interior-pad + channel-first im2col (tiny XLA ops)
# ----------------------------------------------------------------------------
def _conv_transpose_patches_t(xcf, k, stride, padding):
    """Rewrite ConvTranspose2d as (interior pad) -> im2col, channel-first.

    xcf:(Cin, N, H, W).  Returns patches_t:(k*k*Cin, N*OH*OW) with rows ordered
    (tap, cin) and columns ordered (n, oh, ow), plus (N, OH, OW).
    """
    cin, n, h, w = xcf.shape
    edge = k - 1 - padding
    inter = stride - 1
    # dilation + zero padding in a single pad HLO (interior padding = dilation)
    xp = jax.lax.pad(
        xcf, jnp.array(0.0, xcf.dtype),
        ((0, 0, 0), (0, 0, 0), (edge, edge, inter), (edge, edge, inter)))
    hp, wp = xp.shape[2], xp.shape[3]
    oh, ow = hp - k + 1, wp - k + 1
    taps = [xp[:, :, i:i + oh, j:j + ow] for i in range(k) for j in range(k)]
    patches_t = jnp.concatenate(taps, axis=0).reshape(k * k * cin, n * oh * ow)
    return patches_t, (n, oh, ow)


def prepare_params(params):
    """One-time weight/affine preprocessing (hoisted out of the forward).

    ConvTranspose2d weight (Cin, Cout, k, k) -> equivalent plain-conv GEMM
    weight of shape (Cout, k*k*Cin): spatial flip, columns ordered (tap, cin)
    to match _conv_transpose_patches_t row order.
    """
    prep = {}
    for li in (1, 2, 3, 4):
        w = params[f"w{li}"]
        cin, cout, k = w.shape[0], w.shape[1], w.shape[2]
        wflip = w[:, :, ::-1, ::-1]
        prep[f"wt{li}"] = jnp.transpose(wflip, (1, 2, 3, 0)).reshape(cout, k * k * cin)
    for li in (1, 2, 3):
        prep[f"g{li}"] = params[f"gamma{li}"].reshape(-1, 1).astype(jnp.float32)
        prep[f"b{li}"] = params[f"beta{li}"].reshape(-1, 1).astype(jnp.float32)
    return prep


# ----------------------------------------------------------------------------
# Generator forward
# ----------------------------------------------------------------------------
def generator_forward(z, prep):
    """z: (N, nz, 1, 1) float32 -> (N, nc, 28, 28) float32 (PyTorch semantics)."""
    n, nz = z.shape[0], z.shape[1]
    # channel-first activation layout (Cin, N, H, W) throughout the pipeline
    x = jnp.transpose(z.reshape(n, nz), (1, 0)).reshape(nz, n, 1, 1)

    # layers 1-3: ConvTranspose + fused BN + ReLU (one pallas_call each)
    for li, k, s, p in ((1, 4, 1, 0), (2, 3, 2, 1), (3, 4, 2, 1)):
        patches_t, (n, oh, ow) = _conv_transpose_patches_t(x, k, s, p)
        y = pallas_convT_bn_relu(prep[f"wt{li}"], patches_t,
                                 prep[f"g{li}"], prep[f"b{li}"])
        x = y.reshape(y.shape[0], n, oh, ow)

    # layer 4: ConvTranspose + Tanh
    patches_t, (n, oh, ow) = _conv_transpose_patches_t(x, 4, 2, 1)
    y = pallas_convT_tanh(prep["wt4"], patches_t)        # (nc, N*28*28)
    out = y.reshape(y.shape[0], n, oh, ow)               # (nc, N, 28, 28)
    return jnp.transpose(out, (1, 0, 2, 3))              # external API is NCHW


def init_params(key, nz, ngf, nc):
    k1, k2, k3, k4 = jax.random.split(key, 4)
    return {
        # ConvTranspose2d weight layout: (Cin, Cout, kH, kW), DCGAN-style N(0, 0.02)
        "w1": 0.02 * jax.random.normal(k1, (nz, ngf * 4, 4, 4), jnp.float32),
        "w2": 0.02 * jax.random.normal(k2, (ngf * 4, ngf * 2, 3, 3), jnp.float32),
        "w3": 0.02 * jax.random.normal(k3, (ngf * 2, ngf, 4, 4), jnp.float32),
        "w4": 0.02 * jax.random.normal(k4, (ngf, nc, 4, 4), jnp.float32),
        # BatchNorm affine params (PyTorch default init: weight=1, bias=0)
        "gamma1": jnp.ones((ngf * 4,), jnp.float32),
        "beta1": jnp.zeros((ngf * 4,), jnp.float32),
        "gamma2": jnp.ones((ngf * 2,), jnp.float32),
        "beta2": jnp.zeros((ngf * 2,), jnp.float32),
        "gamma3": jnp.ones((ngf,), jnp.float32),
        "beta3": jnp.zeros((ngf,), jnp.float32),
    }


# ----------------------------------------------------------------------------
# Pure-JAX reference (for the correctness check only)
# ----------------------------------------------------------------------------
def reference_forward(z, params, eps=1e-5):
    def convT(x, w, s, p):
        k = w.shape[2]
        w_oihw = jnp.transpose(w[:, :, ::-1, ::-1], (1, 0, 2, 3))
        return jax.lax.conv_general_dilated(
            x, w_oihw, window_strides=(1, 1),
            padding=[(k - 1 - p, k - 1 - p)] * 2,
            lhs_dilation=(s, s),
            dimension_numbers=("NCHW", "OIHW", "NCHW"),
            precision=jax.lax.Precision.HIGHEST)

    def bn_relu(x, g, b):
        mean = jnp.mean(x, axis=(0, 2, 3), keepdims=True)
        var = jnp.mean((x - mean) ** 2, axis=(0, 2, 3), keepdims=True)
        xn = (x - mean) * jax.lax.rsqrt(var + eps)
        return jnp.maximum(xn * g.reshape(1, -1, 1, 1) + b.reshape(1, -1, 1, 1), 0.0)

    x = bn_relu(convT(z, params["w1"], 1, 0), params["gamma1"], params["beta1"])
    x = bn_relu(convT(x, params["w2"], 2, 1), params["gamma2"], params["beta2"])
    x = bn_relu(convT(x, params["w3"], 2, 1), params["gamma3"], params["beta3"])
    return jnp.tanh(convT(x, params["w4"], 2, 1))


if __name__ == "__main__":
    # small config; ngpu of the PyTorch module is a device-placement arg (unused)
    N, nz, ngf, nc = 2, 16, 8, 3

    key = jax.random.PRNGKey(0)
    kz, kp = jax.random.split(key)
    z = jax.random.normal(kz, (N, nz, 1, 1), jnp.float32)
    params = init_params(kp, nz, ngf, nc)
    prep = prepare_params(params)            # one-time weight preprocessing

    fwd = jax.jit(generator_forward)
    out = jax.block_until_ready(fwd(z, prep))

    assert out.shape == (N, nc, 28, 28), out.shape
    assert bool(jnp.all(jnp.isfinite(out)))
    assert bool(jnp.all(jnp.abs(out) <= 1.0 + 1e-6))   # tanh range

    ref = reference_forward(z, params)
    assert bool(jnp.allclose(out, ref, atol=1e-2, rtol=1e-2)), \
        float(jnp.max(jnp.abs(out - ref)))
    print("KERNEL_OK")
</pallas_src>

<mosaic_0001>
module attributes {stable_mosaic.version = 11 : i64} {
  func.func @_gemm_bn_relu_kernel(%arg0: i32, %arg1: memref<32x256xf32, #tpu.memory_space<vmem>>, %arg2: memref<256x32xf32, #tpu.memory_space<vmem>>, %arg3: memref<32x1xf32, #tpu.memory_space<vmem>>, %arg4: memref<32x1xf32, #tpu.memory_space<vmem>>, %arg5: memref<32x32xf32, #tpu.memory_space<vmem>>) attributes {dimension_semantics = [#tpu.dimension_semantics<arbitrary>], iteration_bounds = array<i64: 1>, scalar_prefetch = 0 : i64, scratch_operands = 0 : i64, tpu.core_type = #tpu.core_type<tc>, window_params = [{pipeline_mode = #tpu.pipeline_mode<synchronous>, transform_indices = @transform_0, window_bounds = array<i64: 32, 256>}, {pipeline_mode = #tpu.pipeline_mode<synchronous>, transform_indices = @transform_1, window_bounds = array<i64: 256, 32>}, {pipeline_mode = #tpu.pipeline_mode<synchronous>, transform_indices = @transform_2, window_bounds = array<i64: 32, 1>}, {pipeline_mode = #tpu.pipeline_mode<synchronous>, transform_indices = @transform_3, window_bounds = array<i64: 32, 1>}, {pipeline_mode = #tpu.pipeline_mode<synchronous>, transform_indices = @transform_4, window_bounds = array<i64: 32, 32>}]} {
    %c0 = arith.constant 0 : index
    %c0_0 = arith.constant 0 : index
    %0 = vector.load %arg1[%c0, %c0_0] : memref<32x256xf32, #tpu.memory_space<vmem>>, vector<32x256xf32>
    %c0_1 = arith.constant 0 : index
    %c0_2 = arith.constant 0 : index
    %1 = vector.load %arg2[%c0_1, %c0_2] : memref<256x32xf32, #tpu.memory_space<vmem>>, vector<256x32xf32>
    %cst = arith.constant dense<0.000000e+00> : vector<32x32xf32>
    %2 = tpu.matmul %0, %1, %cst {dimension_numbers = #tpu.dot_dimension_numbers<[1], [0], [0], [1], [0, 0, 1, 1], [], []>} : vector<32x256xf32>, vector<256x32xf32>, vector<32x32xf32> -> vector<32x32xf32>
    %cst_3 = arith.constant dense<0.000000e+00> : vector<32xf32>
    %3 = vector.multi_reduction <add>, %2, %cst_3 [1] : vector<32x32xf32> to vector<32xf32>
    %4 = vector.shape_cast %3 : vector<32xf32> to vector<32x1xf32>
    %cst_4 = arith.constant 3.125000e-02 : f32
    %5 = vector.broadcast %cst_4 : f32 to vector<32x1xf32>
    %6 = arith.mulf %4, %5 : vector<32x1xf32>
    %7 = arith.mulf %2, %2 : vector<32x32xf32>
    %cst_5 = arith.constant dense<0.000000e+00> : vector<32xf32>
    %8 = vector.multi_reduction <add>, %7, %cst_5 [1] : vector<32x32xf32> to vector<32xf32>
    %9 = vector.shape_cast %8 : vector<32xf32> to vector<32x1xf32>
    %cst_6 = arith.constant 3.125000e-02 : f32
    %10 = vector.broadcast %cst_6 : f32 to vector<32x1xf32>
    %11 = arith.mulf %9, %10 : vector<32x1xf32>
    %12 = arith.mulf %6, %6 : vector<32x1xf32>
    %13 = arith.subf %11, %12 : vector<32x1xf32>
    %cst_7 = arith.constant 9.99999974E-6 : f32
    %14 = vector.broadcast %cst_7 : f32 to vector<32x1xf32>
    %15 = arith.addf %13, %14 : vector<32x1xf32>
    %16 = math.rsqrt %15 : vector<32x1xf32>
    %17 = vector.broadcast %6 : vector<32x1xf32> to vector<32x32xf32>
    %18 = arith.subf %2, %17 : vector<32x32xf32>
    %c0_8 = arith.constant 0 : index
    %c0_9 = arith.constant 0 : index
    %19 = vector.load %arg3[%c0_8, %c0_9] : memref<32x1xf32, #tpu.memory_space<vmem>>, vector<32x1xf32>
    %20 = arith.mulf %16, %19 : vector<32x1xf32>
    %21 = vector.broadcast %20 : vector<32x1xf32> to vector<32x32xf32>
    %22 = arith.mulf %18, %21 : vector<32x32xf32>
    %c0_10 = arith.constant 0 : index
    %c0_11 = arith.constant 0 : index
    %23 = vector.load %arg4[%c0_10, %c0_11] : memref<32x1xf32, #tpu.memory_space<vmem>>, vector<32x1xf32>
    %24 = vector.broadcast %23 : vector<32x1xf32> to vector<32x32xf32>
    %25 = arith.addf %22, %24 : vector<32x32xf32>
    %cst_12 = arith.constant 0.000000e+00 : f32
    %26 = vector.broadcast %cst_12 : f32 to vector<32x32xf32>
    %27 = arith.maximumf %25, %26 : vector<32x32xf32>
    %c0_13 = arith.constant 0 : index
    %c0_14 = arith.constant 0 : index
    %28 = vector.load %arg5[%c0_13, %c0_14] : memref<32x32xf32, #tpu.memory_space<vmem>>, vector<32x32xf32>
    tpu.vector_store %arg5[%c0_13, %c0_14], %27 {strides = array<i32>} : memref<32x32xf32, #tpu.memory_space<vmem>>, vector<32x32xf32>,
    return
  }
  func.func @transform_0(%arg0: i32) -> (i32, i32) {
    %c0_i32 = arith.constant 0 : i32
    %c0_i32_0 = arith.constant 0 : i32
    %c0_i32_1 = arith.constant 0 : i32
    return %c0_i32, %c0_i32_0 : i32, i32
  }
  func.func @transform_1(%arg0: i32) -> (i32, i32) {
    %c0_i32 = arith.constant 0 : i32
    %c0_i32_0 = arith.constant 0 : i32
    %c0_i32_1 = arith.constant 0 : i32
    return %c0_i32, %c0_i32_0 : i32, i32
  }
  func.func @transform_2(%arg0: i32) -> (i32, i32) {
    %c0_i32 = arith.constant 0 : i32
    %c0_i32_0 = arith.constant 0 : i32
    %c0_i32_1 = arith.constant 0 : i32
    return %c0_i32, %c0_i32_0 : i32, i32
  }
  func.func @transform_3(%arg0: i32) -> (i32, i32) {
    %c0_i32 = arith.constant 0 : i32
    %c0_i32_0 = arith.constant 0 : i32
    %c0_i32_1 = arith.constant 0 : i32
    return %c0_i32, %c0_i32_0 : i32, i32
  }
  func.func @transform_4(%arg0: i32) -> (i32, i32) {
    %c0_i32 = arith.constant 0 : i32
    %c0_i32_0 = arith.constant 0 : i32
    %c0_i32_1 = arith.constant 0 : i32
    return %c0_i32, %c0_i32_0 : i32, i32
  }
}

module attributes {stable_mosaic.version = 11 : i64} {
  func.func @_gemm_bn_relu_kernel(%arg0: i32, %arg1: memref<16x288xf32, #tpu.memory_space<vmem>>, %arg2: memref<288x98xf32, #tpu.memory_space<vmem>>, %arg3: memref<16x1xf32, #tpu.memory_space<vmem>>, %arg4: memref<16x1xf32, #tpu.memory_space<vmem>>, %arg5: memref<16x98xf32, #tpu.memory_space<vmem>>) attributes {dimension_semantics = [#tpu.dimension_semantics<arbitrary>], iteration_bounds = array<i64: 1>, scalar_prefetch = 0 : i64, scratch_operands = 0 : i64, tpu.core_type = #tpu.core_type<tc>, window_params = [{pipeline_mode = #tpu.pipeline_mode<synchronous>, transform_indices = @transform_0, window_bounds = array<i64: 16, 288>}, {pipeline_mode = #tpu.pipeline_mode<synchronous>, transform_indices = @transform_1, window_bounds = array<i64: 288, 98>}, {pipeline_mode = #tpu.pipeline_mode<synchronous>, transform_indices = @transform_2, window_bounds = array<i64: 16, 1>}, {pipeline_mode = #tpu.pipeline_mode<synchronous>, transform_indices = @transform_3, window_bounds = array<i64: 16, 1>}, {pipeline_mode = #tpu.pipeline_mode<synchronous>, transform_indices = @transform_4, window_bounds = array<i64: 16, 98>}]} {
    %c0 = arith.constant 0 : index
    %c0_0 = arith.constant 0 : index
    %0 = vector.load %arg1[%c0, %c0_0] : memref<16x288xf32, #tpu.memory_space<vmem>>, vector<16x288xf32>
    %c0_1 = arith.constant 0 : index
    %c0_2 = arith.constant 0 : index
    %1 = vector.load %arg2[%c0_1, %c0_2] : memref<288x98xf32, #tpu.memory_space<vmem>>, vector<288x98xf32>
    %cst = arith.constant dense<0.000000e+00> : vector<16x98xf32>
    %2 = tpu.matmul %0, %1, %cst {dimension_numbers = #tpu.dot_dimension_numbers<[1], [0], [0], [1], [0, 0, 1, 1], [], []>} : vector<16x288xf32>, vector<288x98xf32>, vector<16x98xf32> -> vector<16x98xf32>
    %cst_3 = arith.constant dense<0.000000e+00> : vector<16xf32>
    %3 = vector.multi_reduction <add>, %2, %cst_3 [1] : vector<16x98xf32> to vector<16xf32>
    %4 = vector.shape_cast %3 : vector<16xf32> to vector<16x1xf32>
    %cst_4 = arith.constant 0.0102040814 : f32
    %5 = vector.broadcast %cst_4 : f32 to vector<16x1xf32>
    %6 = arith.mulf %4, %5 : vector<16x1xf32>
    %7 = arith.mulf %2, %2 : vector<16x98xf32>
    %cst_5 = arith.constant dense<0.000000e+00> : vector<16xf32>
    %8 = vector.multi_reduction <add>, %7, %cst_5 [1] : vector<16x98xf32> to vector<16xf32>
    %9 = vector.shape_cast %8 : vector<16xf32> to vector<16x1xf32>
    %cst_6 = arith.constant 0.0102040814 : f32
    %10 = vector.broadcast %cst_6 : f32 to vector<16x1xf32>
    %11 = arith.mulf %9, %10 : vector<16x1xf32>
    %12 = arith.mulf %6, %6 : vector<16x1xf32>
    %13 = arith.subf %11, %12 : vector<16x1xf32>
    %cst_7 = arith.constant 9.99999974E-6 : f32
    %14 = vector.broadcast %cst_7 : f32 to vector<16x1xf32>
    %15 = arith.addf %13, %14 : vector<16x1xf32>
    %16 = math.rsqrt %15 : vector<16x1xf32>
    %17 = vector.broadcast %6 : vector<16x1xf32> to vector<16x98xf32>
    %18 = arith.subf %2, %17 : vector<16x98xf32>
    %c0_8 = arith.constant 0 : index
    %c0_9 = arith.constant 0 : index
    %19 = vector.load %arg3[%c0_8, %c0_9] : memref<16x1xf32, #tpu.memory_space<vmem>>, vector<16x1xf32>
    %20 = arith.mulf %16, %19 : vector<16x1xf32>
    %21 = vector.broadcast %20 : vector<16x1xf32> to vector<16x98xf32>
    %22 = arith.mulf %18, %21 : vector<16x98xf32>
    %c0_10 = arith.constant 0 : index
    %c0_11 = arith.constant 0 : index
    %23 = vector.load %arg4[%c0_10, %c0_11] : memref<16x1xf32, #tpu.memory_space<vmem>>, vector<16x1xf32>
    %24 = vector.broadcast %23 : vector<16x1xf32> to vector<16x98xf32>
    %25 = arith.addf %22, %24 : vector<16x98xf32>
    %cst_12 = arith.constant 0.000000e+00 : f32
    %26 = vector.broadcast %cst_12 : f32 to vector<16x98xf32>
    %27 = arith.maximumf %25, %26 : vector<16x98xf32>
    %c0_13 = arith.constant 0 : index
    %c0_14 = arith.constant 0 : index
    %28 = vector.load %arg5[%c0_13, %c0_14] : memref<16x98xf32, #tpu.memory_space<vmem>>, vector<16x98xf32>
    tpu.vector_store %arg5[%c0_13, %c0_14], %27 {strides = array<i32>} : memref<16x98xf32, #tpu.memory_space<vmem>>, vector<16x98xf32>,
    return
  }
  func.func @transform_0(%arg0: i32) -> (i32, i32) {
    %c0_i32 = arith.constant 0 : i32
    %c0_i32_0 = arith.constant 0 : i32
    %c0_i32_1 = arith.constant 0 : i32
    return %c0_i32, %c0_i32_0 : i32, i32
  }
  func.func @transform_1(%arg0: i32) -> (i32, i32) {
    %c0_i32 = arith.constant 0 : i32
    %c0_i32_0 = arith.constant 0 : i32
    %c0_i32_1 = arith.constant 0 : i32
    return %c0_i32, %c0_i32_0 : i32, i32
  }
  func.func @transform_2(%arg0: i32) -> (i32, i32) {
    %c0_i32 = arith.constant 0 : i32
    %c0_i32_0 = arith.constant 0 : i32
    %c0_i32_1 = arith.constant 0 : i32
    return %c0_i32, %c0_i32_0 : i32, i32
  }
  func.func @transform_3(%arg0: i32) -> (i32, i32) {
    %c0_i32 = arith.constant 0 : i32
    %c0_i32_0 = arith.constant 0 : i32
    %c0_i32_1 = arith.constant 0 : i32
    return %c0_i32, %c0_i32_0 : i32, i32
  }
  func.func @transform_4(%arg0: i32) -> (i32, i32) {
    %c0_i32 = arith.constant 0 : i32
    %c0_i32_0 = arith.constant 0 : i32
    %c0_i32_1 = arith.constant 0 : i32
    return %c0_i32, %c0_i32_0 : i32, i32
  }
}

module attributes {stable_mosaic.version = 11 : i64} {
  func.func @_gemm_bn_relu_kernel(%arg0: i32, %arg1: memref<8x256xf32, #tpu.memory_space<vmem>>, %arg2: memref<256x392xf32, #tpu.memory_space<vmem>>, %arg3: memref<8x1xf32, #tpu.memory_space<vmem>>, %arg4: memref<8x1xf32, #tpu.memory_space<vmem>>, %arg5: memref<8x392xf32, #tpu.memory_space<vmem>>) attributes {dimension_semantics = [#tpu.dimension_semantics<arbitrary>], iteration_bounds = array<i64: 1>, scalar_prefetch = 0 : i64, scratch_operands = 0 : i64, tpu.core_type = #tpu.core_type<tc>, window_params = [{pipeline_mode = #tpu.pipeline_mode<synchronous>, transform_indices = @transform_0, window_bounds = array<i64: 8, 256>}, {pipeline_mode = #tpu.pipeline_mode<synchronous>, transform_indices = @transform_1, window_bounds = array<i64: 256, 392>}, {pipeline_mode = #tpu.pipeline_mode<synchronous>, transform_indices = @transform_2, window_bounds = array<i64: 8, 1>}, {pipeline_mode = #tpu.pipeline_mode<synchronous>, transform_indices = @transform_3, window_bounds = array<i64: 8, 1>}, {pipeline_mode = #tpu.pipeline_mode<synchronous>, transform_indices = @transform_4, window_bounds = array<i64: 8, 392>}]} {
    %c0 = arith.constant 0 : index
    %c0_0 = arith.constant 0 : index
    %0 = vector.load %arg1[%c0, %c0_0] : memref<8x256xf32, #tpu.memory_space<vmem>>, vector<8x256xf32>
    %c0_1 = arith.constant 0 : index
    %c0_2 = arith.constant 0 : index
    %1 = vector.load %arg2[%c0_1, %c0_2] : memref<256x392xf32, #tpu.memory_space<vmem>>, vector<256x392xf32>
    %cst = arith.constant dense<0.000000e+00> : vector<8x392xf32>
    %2 = tpu.matmul %0, %1, %cst {dimension_numbers = #tpu.dot_dimension_numbers<[1], [0], [0], [1], [0, 0, 1, 1], [], []>} : vector<8x256xf32>, vector<256x392xf32>, vector<8x392xf32> -> vector<8x392xf32>
    %cst_3 = arith.constant dense<0.000000e+00> : vector<8xf32>
    %3 = vector.multi_reduction <add>, %2, %cst_3 [1] : vector<8x392xf32> to vector<8xf32>
    %4 = vector.shape_cast %3 : vector<8xf32> to vector<8x1xf32>
    %cst_4 = arith.constant 0.00255102036 : f32
    %5 = vector.broadcast %cst_4 : f32 to vector<8x1xf32>
    %6 = arith.mulf %4, %5 : vector<8x1xf32>
    %7 = arith.mulf %2, %2 : vector<8x392xf32>
    %cst_5 = arith.constant dense<0.000000e+00> : vector<8xf32>
    %8 = vector.multi_reduction <add>, %7, %cst_5 [1] : vector<8x392xf32> to vector<8xf32>
    %9 = vector.shape_cast %8 : vector<8xf32> to vector<8x1xf32>
    %cst_6 = arith.constant 0.00255102036 : f32
    %10 = vector.broadcast %cst_6 : f32 to vector<8x1xf32>
    %11 = arith.mulf %9, %10 : vector<8x1xf32>
    %12 = arith.mulf %6, %6 : vector<8x1xf32>
    %13 = arith.subf %11, %12 : vector<8x1xf32>
    %cst_7 = arith.constant 9.99999974E-6 : f32
    %14 = vector.broadcast %cst_7 : f32 to vector<8x1xf32>
    %15 = arith.addf %13, %14 : vector<8x1xf32>
    %16 = math.rsqrt %15 : vector<8x1xf32>
    %17 = vector.broadcast %6 : vector<8x1xf32> to vector<8x392xf32>
    %18 = arith.subf %2, %17 : vector<8x392xf32>
    %c0_8 = arith.constant 0 : index
    %c0_9 = arith.constant 0 : index
    %19 = vector.load %arg3[%c0_8, %c0_9] : memref<8x1xf32, #tpu.memory_space<vmem>>, vector<8x1xf32>
    %20 = arith.mulf %16, %19 : vector<8x1xf32>
    %21 = vector.broadcast %20 : vector<8x1xf32> to vector<8x392xf32>
    %22 = arith.mulf %18, %21 : vector<8x392xf32>
    %c0_10 = arith.constant 0 : index
    %c0_11 = arith.constant 0 : index
    %23 = vector.load %arg4[%c0_10, %c0_11] : memref<8x1xf32, #tpu.memory_space<vmem>>, vector<8x1xf32>
    %24 = vector.broadcast %23 : vector<8x1xf32> to vector<8x392xf32>
    %25 = arith.addf %22, %24 : vector<8x392xf32>
    %cst_12 = arith.constant 0.000000e+00 : f32
    %26 = vector.broadcast %cst_12 : f32 to vector<8x392xf32>
    %27 = arith.maximumf %25, %26 : vector<8x392xf32>
    %c0_13 = arith.constant 0 : index
    %c0_14 = arith.constant 0 : index
    %28 = vector.load %arg5[%c0_13, %c0_14] : memref<8x392xf32, #tpu.memory_space<vmem>>, vector<8x392xf32>
    tpu.vector_store %arg5[%c0_13, %c0_14], %27 {strides = array<i32>} : memref<8x392xf32, #tpu.memory_space<vmem>>, vector<8x392xf32>,
    return
  }
  func.func @transform_0(%arg0: i32) -> (i32, i32) {
    %c0_i32 = arith.constant 0 : i32
    %c0_i32_0 = arith.constant 0 : i32
    %c0_i32_1 = arith.constant 0 : i32
    return %c0_i32, %c0_i32_0 : i32, i32
  }
  func.func @transform_1(%arg0: i32) -> (i32, i32) {
    %c0_i32 = arith.constant 0 : i32
    %c0_i32_0 = arith.constant 0 : i32
    %c0_i32_1 = arith.constant 0 : i32
    return %c0_i32, %c0_i32_0 : i32, i32
  }
  func.func @transform_2(%arg0: i32) -> (i32, i32) {
    %c0_i32 = arith.constant 0 : i32
    %c0_i32_0 = arith.constant 0 : i32
    %c0_i32_1 = arith.constant 0 : i32
    return %c0_i32, %c0_i32_0 : i32, i32
  }
  func.func @transform_3(%arg0: i32) -> (i32, i32) {
    %c0_i32 = arith.constant 0 : i32
    %c0_i32_0 = arith.constant 0 : i32
    %c0_i32_1 = arith.constant 0 : i32
    return %c0_i32, %c0_i32_0 : i32, i32
  }
  func.func @transform_4(%arg0: i32) -> (i32, i32) {
    %c0_i32 = arith.constant 0 : i32
    %c0_i32_0 = arith.constant 0 : i32
    %c0_i32_1 = arith.constant 0 : i32
    return %c0_i32, %c0_i32_0 : i32, i32
  }
}

module attributes {stable_mosaic.version = 11 : i64} {
  func.func @_gemm_tanh_kernel(%arg0: i32, %arg1: memref<3x128xf32, #tpu.memory_space<vmem>>, %arg2: memref<128x1568xf32, #tpu.memory_space<vmem>>, %arg3: memref<3x1568xf32, #tpu.memory_space<vmem>>) attributes {dimension_semantics = [#tpu.dimension_semantics<arbitrary>], iteration_bounds = array<i64: 1>, scalar_prefetch = 0 : i64, scratch_operands = 0 : i64, tpu.core_type = #tpu.core_type<tc>, window_params = [{pipeline_mode = #tpu.pipeline_mode<synchronous>, transform_indices = @transform_0, window_bounds = array<i64: 3, 128>}, {pipeline_mode = #tpu.pipeline_mode<synchronous>, transform_indices = @transform_1, window_bounds = array<i64: 128, 1568>}, {pipeline_mode = #tpu.pipeline_mode<synchronous>, transform_indices = @transform_2, window_bounds = array<i64: 3, 1568>}]} {
    %c0 = arith.constant 0 : index
    %c0_0 = arith.constant 0 : index
    %0 = vector.load %arg1[%c0, %c0_0] : memref<3x128xf32, #tpu.memory_space<vmem>>, vector<3x128xf32>
    %c0_1 = arith.constant 0 : index
    %c0_2 = arith.constant 0 : index
    %1 = vector.load %arg2[%c0_1, %c0_2] : memref<128x1568xf32, #tpu.memory_space<vmem>>, vector<128x1568xf32>
    %cst = arith.constant dense<0.000000e+00> : vector<3x1568xf32>
    %2 = tpu.matmul %0, %1, %cst {dimension_numbers = #tpu.dot_dimension_numbers<[1], [0], [0], [1], [0, 0, 1, 1], [], []>} : vector<3x128xf32>, vector<128x1568xf32>, vector<3x1568xf32> -> vector<3x1568xf32>
    %3 = math.tanh %2 : vector<3x1568xf32>
    %c0_3 = arith.constant 0 : index
    %c0_4 = arith.constant 0 : index
    %4 = vector.load %arg3[%c0_3, %c0_4] : memref<3x1568xf32, #tpu.memory_space<vmem>>, vector<3x1568xf32>
    tpu.vector_store %arg3[%c0_3, %c0_4], %3 {strides = array<i32>} : memref<3x1568xf32, #tpu.memory_space<vmem>>, vector<3x1568xf32>,
    return
  }
  func.func @transform_0(%arg0: i32) -> (i32, i32) {
    %c0_i32 = arith.constant 0 : i32
    %c0_i32_0 = arith.constant 0 : i32
    %c0_i32_1 = arith.constant 0 : i32
    return %c0_i32, %c0_i32_0 : i32, i32
  }
  func.func @transform_1(%arg0: i32) -> (i32, i32) {
    %c0_i32 = arith.constant 0 : i32
    %c0_i32_0 = arith.constant 0 : i32
    %c0_i32_1 = arith.constant 0 : i32
    return %c0_i32, %c0_i32_0 : i32, i32
  }
  func.func @transform_2(%arg0: i32) -> (i32, i32) {
    %c0_i32 = arith.constant 0 : i32
    %c0_i32_0 = arith.constant 0 : i32
    %c0_i32_1 = arith.constant 0 : i32
    return %c0_i32, %c0_i32_0 : i32, i32
  }
}

</mosaic_0001>

<bundles_post_ra>
// kernel: generator_forward.4
= control target key start
LH: loop header
LB: loop body
LE: loop exit
PB: predicated region body
PF: predicated region fallthrough
CT: control target
= control target key end

     0   :  { %9 = vsyncpa [#allocation3], 0  ;;  %s370_s18 = smov [#allocation2]   ;;  %s371_s20 = smov 256   ;;  %s590_s0 = inlined_call_operand.hbm [shape: f32[32,256], index: 0, kind: input, shape index: {}]   ;;  %s591_s1 = inlined_call_operand.vmem [shape: f32[256,32], index: 1, kind: input, shape index: {}]   ;;  %s592_s2 = inlined_call_operand.vmem [shape: f32[32,1], index: 2, kind: input, shape index: {}]   ;;  %s593_s3 = inlined_call_operand.vmem [shape: f32[32,1], index: 3, kind: input, shape index: {}]   ;;  %s594_s4 = inlined_call_operand.vmem [shape: f32[32,32], index: 4, kind: output, shape index: {}]  }
   0x1   :  { %s14_s17 = sshll.u32 %s590_s0, 4  ;;  %s16_s19 = sshll.u32 %s370_s18, 4  ;;  %s15_s17 = int_to_ptr.hbm [resolvable:$true] %s14_s17  ;;  %s17_s19 = int_to_ptr.vmem [resolvable:$true] %s16_s19 }
   0x2   :  { %s372_s21 = smov 16  }
   0x3   :  { %22 = dma.hbm_to_vmem [thread:$0]  %s15_s17, 1024, %s17_s19, [#allocation3], %s371_s20, %s371_s20, %s372_s21  }
   0x4   :  { %368 = dma.done.wait [#allocation3], 1024  }
   0x5   :  { %369 = vsyncadd [#allocation3], 4294966272  ;;  %v56_v0 = vld [vmem:[%s591_s1 + $0x78] sm:$0xff]  ;;  %v55_v2 = vld [vmem:[%s591_s1 + $0x70] sm:$0xff]  ;;  %vm131_vm0 = vcmask 261120  }
   0x6   :  { %v72_v1 = vld [vmem:[%s591_s1 + $0xf8] sm:$0xff]  ;;  %73 = vmatpush.msra.mxu0 %v56_v0  ;;  %297 = vmatpush.msra.mxu2 %v56_v0  ;;  %v71_v3 = vld [vmem:[%s591_s1 + $0xf0] sm:$0xff]  ;;  %v54_v4 = vld [vmem:[%s591_s1 + $0x68] sm:$0xff]  ;;  %v373_v0 = vmov 0  }
   0x7   :  { %102 = vmatpush.msra.mxu1 %v72_v1  ;;  %313 = vmatpush.msra.mxu3 %v72_v1  ;;  %v70_v5 = vld [vmem:[%s591_s1 + $0xe8] sm:$0xff]  ;;  %v53_v6 = vld [vmem:[%s591_s1 + $0x60] sm:$0xff]  ;;  %v52_v8 = vld [vmem:[%s591_s1 + $0x58] sm:$0xff] }
   0x8   :  { %74 = vmatpush.msra.mxu0 %v55_v2  ;;  %298 = vmatpush.msra.mxu2 %v55_v2  ;;  %v69_v7 = vld [vmem:[%s591_s1 + $0xe0] sm:$0xff]  ;;  %v68_v9 = vld [vmem:[%s591_s1 + $0xd8] sm:$0xff]  ;;  %v51_v10 = vld [vmem:[%s591_s1 + $0x50] sm:$0xff] }
   0x9   :  { %103 = vmatpush.msra.mxu1 %v71_v3  ;;  %314 = vmatpush.msra.mxu3 %v71_v3  ;;  %v67_v11 = vld [vmem:[%s591_s1 + $0xd0] sm:$0xff]  ;;  %v50_v12 = vld [vmem:[%s591_s1 + $0x48] sm:$0xff]  ;;  %v49_v14 = vld [vmem:[%s591_s1 + $0x40] sm:$0xff] }
   0xa   :  { %75 = vmatpush.msra.mxu0 %v54_v4  ;;  %299 = vmatpush.msra.mxu2 %v54_v4  ;;  %v66_v13 = vld [vmem:[%s591_s1 + $0xc8] sm:$0xff]  ;;  %v65_v15 = vld [vmem:[%s591_s1 + $0xc0] sm:$0xff]  ;;  %v48_v16 = vld [vmem:[%s591_s1 + $0x38] sm:$0xff] }
   0xb   :  { %104 = vmatpush.msra.mxu1 %v70_v5  ;;  %315 = vmatpush.msra.mxu3 %v70_v5  ;;  %v64_v17 = vld [vmem:[%s591_s1 + $0xb8] sm:$0xff]  ;;  %v47_v18 = vld [vmem:[%s591_s1 + $0x30] sm:$0xff]  ;;  %v46_v20 = vld [vmem:[%s591_s1 + $0x28] sm:$0xff] }
   0xc   :  { %76 = vmatpush.msra.mxu0 %v53_v6  ;;  %300 = vmatpush.msra.mxu2 %v53_v6  ;;  %v63_v19 = vld [vmem:[%s591_s1 + $0xb0] sm:$0xff]  ;;  %v62_v21 = vld [vmem:[%s591_s1 + $0xa8] sm:$0xff]  ;;  %v45_v22 = vld [vmem:[%s591_s1 + $0x20] sm:$0xff] }
   0xd   :  { %105 = vmatpush.msra.mxu1 %v69_v7  ;;  %316 = vmatpush.msra.mxu3 %v69_v7  ;;  %v61_v23 = vld [vmem:[%s591_s1 + $0xa0] sm:$0xff]  ;;  %v44_v24 = vld [vmem:[%s591_s1 + $0x18] sm:$0xff]  ;;  %v43_v26 = vld [vmem:[%s591_s1 + $0x10] sm:$0xff] }
   0xe   :  { %77 = vmatpush.msra.mxu0 %v52_v8  ;;  %301 = vmatpush.msra.mxu2 %v52_v8  ;;  %v60_v25 = vld [vmem:[%s591_s1 + $0x98] sm:$0xff]  ;;  %v59_v27 = vld [vmem:[%s591_s1 + $0x90] sm:$0xff]  ;;  %v42_v28 = vld [vmem:[%s591_s1 + $0x8] sm:$0xff] }
   0xf   :  { %106 = vmatpush.msra.mxu1 %v68_v9  ;;  %317 = vmatpush.msra.mxu3 %v68_v9  ;;  %v58_v29 = vld [vmem:[%s591_s1 + $0x88] sm:$0xff]  ;;  %v41_v30 = vld [vmem:[%s591_s1] sm:$0xff]  ;;  %v35_v36 = vld [vmem:[#allocation2 + $0x10] sm:$0xff] }
  0x10   :  { %78 = vmatpush.msra.mxu0 %v51_v10  ;;  %302 = vmatpush.msra.mxu2 %v51_v10  ;;  %v57_v31 = vld [vmem:[%s591_s1 + $0x80] sm:$0xff]  ;;  %v34_v34 = vld [vmem:[#allocation2 + $0x8] sm:$0xff]  ;;  %v39_v37 = vld [vmem:[#allocation2 + $0x30] sm:$0xff] }
  0x11   :  { %107 = vmatpush.msra.mxu1 %v67_v11  ;;  %318 = vmatpush.msra.mxu3 %v67_v11  ;;  %v33_v32 = vld [vmem:[#allocation2] sm:$0xff]  ;;  %v38_v35 = vld [vmem:[#allocation2 + $0x28] sm:$0xff]  ;;  %v36_v38 = vld [vmem:[#allocation2 + $0x18] sm:$0xff] }
  0x12   :  { %79 = vmatpush.msra.mxu0 %v50_v12  ;;  %303 = vmatpush.msra.mxu2 %v50_v12  ;;  %v37_v33 = vld [vmem:[#allocation2 + $0x20] sm:$0xff]  ;;  %v40_v39 = vld [vmem:[#allocation2 + $0x38] sm:$0xff] }
  0x13   :  { %108 = vmatpush.msra.mxu1 %v66_v13  ;;  %319 = vmatpush.msra.mxu3 %v66_v13 }
  0x14   :  { %80 = vmatpush.msra.mxu0 %v49_v14  ;;  %304 = vmatpush.msra.mxu2 %v49_v14 }
  0x15   :  { %109 = vmatpush.msra.mxu1 %v65_v15  ;;  %320 = vmatpush.msra.mxu3 %v65_v15 }
  0x16   :  { %81 = vmatpush.msra.mxu0 %v48_v16  ;;  %305 = vmatpush.msra.mxu2 %v48_v16 }
  0x17   :  { %110 = vmatpush.msra.mxu1 %v64_v17  ;;  %321 = vmatpush.msra.mxu3 %v64_v17 }
  0x18   :  { %82 = vmatpush.msra.mxu0 %v47_v18  ;;  %306 = vmatpush.msra.mxu2 %v47_v18 }
  0x19   :  { %111 = vmatpush.msra.mxu1 %v63_v19  ;;  %322 = vmatpush.msra.mxu3 %v63_v19 }
  0x1a   :  { %83 = vmatpush.msra.mxu0 %v46_v20  ;;  %307 = vmatpush.msra.mxu2 %v46_v20 }
  0x1b   :  { %112 = vmatpush.msra.mxu1 %v62_v21  ;;  %323 = vmatpush.msra.mxu3 %v62_v21 }
  0x1c   :  { %84 = vmatpush.msra.mxu0 %v45_v22  ;;  %308 = vmatpush.msra.mxu2 %v45_v22 }
  0x1d   :  { %113 = vmatpush.msra.mxu1 %v61_v23  ;;  %324 = vmatpush.msra.mxu3 %v61_v23 }
  0x1e   :  { %85 = vmatpush.msra.mxu0 %v44_v24  ;;  %309 = vmatpush.msra.mxu2 %v44_v24 }
  0x1f   :  { %114 = vmatpush.msra.mxu1 %v60_v25  ;;  %325 = vmatpush.msra.mxu3 %v60_v25 }
  0x20   :  { %86 = vmatpush.msra.mxu0 %v43_v26  ;;  %310 = vmatpush.msra.mxu2 %v43_v26 }
  0x21   :  { %115 = vmatpush.msra.mxu1 %v59_v27  ;;  %326 = vmatpush.msra.mxu3 %v59_v27 }
  0x22   :  { %87 = vmatpush.msra.mxu0 %v42_v28  ;;  %311 = vmatpush.msra.mxu2 %v42_v28 }
  0x23   :  { %116 = vmatpush.msra.mxu1 %v58_v29  ;;  %327 = vmatpush.msra.mxu3 %v58_v29 }
  0x24   :  { %88 = vmatpush.msra.mxu0 %v41_v30  ;;  %312 = vmatpush.msra.mxu2 %v41_v30 }
  0x25   :  { %117 = vmatpush.msra.mxu1 %v57_v31  ;;  %328 = vmatpush.msra.mxu3 %v57_v31 }
  0x26   :  { %89 = vmatmul.f32.vlgmr.msra.gmra.mxu0 %v33_v32  ;;  %95 = vmatmul.f32.vlgmr.msra.gmra.mxu2 %v37_v33 }
  0x27   :  { %118 = vmatmul.f32.vlgmr.msra.gmra.mxu1 %v34_v34  ;;  %124 = vmatmul.f32.vlgmr.msra.gmra.mxu3 %v38_v35  ;;  %v224_v35 = vld [vmem:[%s592_s2] sm:$0xff] }
  0x28   :  { %333 = vset.pattern.permute.xlu2 %v373_v0  ;;  %334 = vset.pattern.permute.xlu0 %v373_v0 }
  0x29   :  { %335 = vset.pattern.permute.xlu1 %v373_v0 }
  0x2e   :  { %92 = vmatmul.f32.gmra.mxu0 %v35_v36  ;;  %98 = vmatmul.f32.gmra.mxu2 %v39_v37 }
  0x2f   :  { %121 = vmatmul.f32.gmra.mxu1 %v36_v38  ;;  %127 = vmatmul.f32.gmra.mxu3 %v40_v39 }
  0xa3   :  { %v90_v40 = vpop.f32.mrf.mxu0 }
  0xa4   :  { %v119_v41 = vpop.f32.mrf.mxu1 }
  0xa5   :  { %v498_v42 = vadd.f32 %v119_v41, %v90_v40 }
  0xa7   :  { %v132_v43 = vsel %vm131_vm0, %v498_v42, 0.0  ;;  %v148_v44 = vmul.f32 %v498_v42, %v498_v42 }
  0xa8   :  { %133 = vadd.xlane.f32.xlu0 %v132_v43 }
  0xa9   :  { %v96_v45 = vpop.f32.mrf.mxu2  ;;  %v152_v46 = vsel %vm131_vm0, %v148_v44, 0.0 }
  0xaa   :  { %v125_v47 = vpop.f32.mrf.mxu3  ;;  %153 = vadd.xlane.f32.xlu2 %v152_v46 }
  0xab   :  { %v505_v48 = vadd.f32 %v125_v47, %v96_v45  ;;  %v93_v49 = vpop.f32.mrf.mxu0 }
  0xac   :  { %v122_v50 = vpop.f32.mrf.mxu1 }
  0xad   :  { %v507_v51 = vadd.f32 %v122_v50, %v93_v49  ;;  %v138_v52 = vsel %vm131_vm0, %v505_v48, 0.0  ;;  %v150_v57 = vmul.f32 %v505_v48, %v505_v48  ;;  %v225_v49 = vld [vmem:[%s592_s2 + $0x8] sm:$0xff] }
  0xae   :  { %139 = vadd.xlane.f32.xlu1 %v138_v52  ;;  %v256_v52 = vld [vmem:[%s593_s3] sm:$0xff] }
  0xaf   :  { %v135_v53 = vsel %vm131_vm0, %v507_v51, 0.0  ;;  %v149_v54 = vmul.f32 %v507_v51, %v507_v51  ;;  %v158_v61 = vsel %vm131_vm0, %v150_v57, 0.0 }
  0xb0   :  { %136 = vadd.xlane.f32.xlu0 %v135_v53 }
  0xb1   :  { %v99_v55 = vpop.f32.mrf.mxu2  ;;  %v155_v56 = vsel %vm131_vm0, %v149_v54, 0.0 }
  0xb2   :  { %v128_v58 = vpop.f32.mrf.mxu3  ;;  %156 = vadd.xlane.f32.xlu2 %v155_v56 }
  0xb3   :  { %v518_v59 = vadd.f32 %v128_v58, %v99_v55 }
  0xb5   :  { %v141_v60 = vsel %vm131_vm0, %v518_v59, 0.0  ;;  %v151_v62 = vmul.f32 %v518_v59, %v518_v59 }
  0xb6   :  { %142 = vadd.xlane.f32.xlu1 %v141_v60 }
  0xb7   :  { %v161_v63 = vsel %vm131_vm0, %v151_v62, 0.0 }
  0xb8   :  { %159 = vadd.xlane.f32.xlu0 %v158_v61  ;;  %v226_v61 = vld [vmem:[%s592_s2 + $0x10] sm:$0xff] }
  0xbe   :  { %162 = vadd.xlane.f32.xlu1 %v161_v63 }
 0x11b   :  { %v134_v1 = vpop.xlane.xlu0 %133 }
 0x11c   :  { %v526_v2 = vmul.f32 0.03125, %v134_v1 }
 0x11d   :  { %v154_v3 = vpop.xlane.xlu2 %153 }
 0x11e   :  { %v168_v4 = vmul.f32 %v526_v2, %v526_v2  ;;  %v164_v5 = vmul.f32 0.03125, %v154_v3 }
 0x120   :  { %v172_v6 = vsub.f32 %v164_v5, %v168_v4  ;;  %v227_v4 = vld [vmem:[%s592_s2 + $0x18] sm:$0xff] }
 0x121   :  { %v140_v7 = vpop.xlane.xlu1 %139 }
 0x122   :  { %v176_v8 = vadd.f32 1e-05, %v172_v6  ;;  %v534_v14 = vmul.f32 0.03125, %v140_v7  ;;  %v257_v7 = vld [vmem:[%s593_s3 + $0x8] sm:$0xff] }
 0x123   :  { %v137_v9 = vpop.xlane.xlu0 %136 }
 0x124   :  { %336 = vrsqrt.f32 %v176_v8  ;;  %v530_v10 = vmul.f32 0.03125, %v137_v9  ;;  %v170_v18 = vmul.f32 %v534_v14, %v534_v14  ;;  %vm186_vm2 = vweird.f32 %v176_v8  ;;  %v259_v9 = vld [vmem:[%s593_s3 + $0x18] sm:$0xff] }
 0x125   :  { %v157_v11 = vpop.xlane.xlu2 %156 }
 0x126   :  { %v169_v12 = vmul.f32 %v530_v10, %v530_v10  ;;  %v165_v13 = vmul.f32 0.03125, %v157_v11 }
 0x128   :  { %v173_v15 = vsub.f32 %v165_v13, %v169_v12  ;;  %v220_v12 = vsub.f32 %v498_v42, %v526_v2  ;;  %v221_v42 = vsub.f32 %v507_v51, %v530_v10 }
 0x129   :  { %v143_v16 = vpop.xlane.xlu1 %142 }
 0x12a   :  { %v337_v17 = vpop.eup %336  ;;  %v177_v19 = vadd.f32 1e-05, %v173_v15  ;;  %v538_v24 = vmul.f32 0.03125, %v143_v16 }
 0x12b   :  { %v181_v20 = vmul.f32 %v337_v17, %v176_v8  ;;  %v160_v21 = vpop.xlane.xlu0 %159  ;;  %vm187_vm1 = vweird.f32 %v337_v17  ;;  %v258_v8 = vld [vmem:[%s593_s3 + $0x10] sm:$0xff] }
 0x12c   :  { %338 = vrsqrt.f32 %v177_v19  ;;  %v166_v22 = vmul.f32 0.03125, %v160_v21  ;;  %v171_v27 = vmul.f32 %v538_v24, %v538_v24  ;;  %vm188_vm3 = vmor %vm186_vm2, %vm187_vm1  ;;  %vm196_vm5 = vweird.f32 %v177_v19 }
 0x12d   :  { %v182_v23 = vmul.f32 %v337_v17, %v181_v20 }
 0x12e   :  { %v174_v25 = vsub.f32 %v166_v22, %v170_v18 }
 0x12f   :  { %v183_v26 = vmul.f32 0.5, %v182_v23 }
 0x130   :  { %v178_v28 = vadd.f32 1e-05, %v174_v25 }
 0x131   :  { %v184_v29 = vsub.f32 1.5, %v183_v26  ;;  %v163_v30 = vpop.xlane.xlu1 %162 }
 0x132   :  { %v339_v31 = vpop.eup %338  ;;  %340 = vrsqrt.f32 %v178_v28  ;;  %v167_v32 = vmul.f32 0.03125, %v163_v30  ;;  %vm206_vm8 = vweird.f32 %v178_v28 }
 0x133   :  { %v191_v33 = vmul.f32 %v339_v31, %v177_v19  ;;  %v185_v34 = vmul.f32 %v337_v17, %v184_v29  ;;  %vm197_vm4 = vweird.f32 %v339_v31  ;;  %v222_v19 = vsub.f32 %v505_v48, %v534_v14 }
 0x134   :  { %v175_v36 = vsub.f32 %v167_v32, %v171_v27  ;;  %vm198_vm6 = vmor %vm196_vm5, %vm197_vm4  ;;  %v223_v48 = vsub.f32 %v518_v59, %v538_v24 }
 0x135   :  { %v192_v37 = vmul.f32 %v339_v31, %v191_v33  ;;  %v189_v38 = vsel %vm188_vm3, %v337_v17, %v185_v34 }
 0x136   :  { %v179_v39 = vadd.f32 1e-05, %v175_v36  ;;  %v228_v40 = vmul.f32 %v224_v35, %v189_v38 }
 0x137   :  { %v193_v41 = vmul.f32 0.5, %v192_v37 }
 0x138   :  { %v341_v43 = vpop.eup %340  ;;  %342 = vrsqrt.f32 %v179_v39  ;;  %234 = vperm.xlu2 %333, %v228_v40   ;;  %vm216_vm10 = vweird.f32 %v179_v39 }
 0x139   :  { %v194_v44 = vsub.f32 1.5, %v193_v41  ;;  %v201_v45 = vmul.f32 %v341_v43, %v178_v28  ;;  %vm207_vm7 = vweird.f32 %v341_v43 }
 0x13a   :  { %vm208_vm9 = vmor %vm206_vm8, %vm207_vm7 }
 0x13b   :  { %v202_v46 = vmul.f32 %v341_v43, %v201_v45  ;;  %v195_v47 = vmul.f32 %v339_v31, %v194_v44 }
 0x13d   :  { %v203_v50 = vmul.f32 0.5, %v202_v46  ;;  %v199_v53 = vsel %vm198_vm6, %v339_v31, %v195_v47 }
 0x13e   :  { %v343_v54 = vpop.eup %342  ;;  %v229_v55 = vmul.f32 %v225_v49, %v199_v53 }
 0x13f   :  { %v204_v56 = vsub.f32 1.5, %v203_v50  ;;  %v211_v57 = vmul.f32 %v343_v54, %v179_v39  ;;  %vm217_vm11 = vweird.f32 %v343_v54 }
 0x140   :  { %262 = vperm.xlu2 %333, %v256_v52   ;;  %239 = vperm.xlu0 %334, %v229_v55   ;;  %vm218_vm12 = vmor %vm216_vm10, %vm217_vm11 }
 0x141   :  { %v212_v58 = vmul.f32 %v343_v54, %v211_v57  ;;  %v205_v60 = vmul.f32 %v341_v43, %v204_v56 }
 0x143   :  { %v213_v62 = vmul.f32 0.5, %v212_v58  ;;  %v209_v63 = vsel %vm208_vm9, %v341_v43, %v205_v60 }
 0x144   :  { %v230_v0 = vmul.f32 %v226_v61, %v209_v63 }
 0x145   :  { %v214_v1 = vsub.f32 1.5, %v213_v62 }
 0x146   :  { %244 = vperm.xlu1 %335, %v230_v0  }
 0x147   :  { %v215_v3 = vmul.f32 %v343_v54, %v214_v1 }
 0x149   :  { %v219_v5 = vsel %vm218_vm12, %v343_v54, %v215_v3 }
 0x14a   :  { %v231_v6 = vmul.f32 %v227_v4, %v219_v5 }
 0x14c   :  { %249 = vperm.xlu2 %333, %v231_v6  }
 0x14e   :  { %267 = vperm.xlu1 %335, %v257_v7  }
 0x154   :  { %272 = vperm.xlu2 %333, %v258_v8  }
 0x156   :  { %277 = vperm.xlu1 %335, %v259_v9  }
 0x192   :  { %v235_v11 = vpop.permute.xlu2 %234 }
 0x193   :  { %v252_v13 = vmul.f32 %v235_v11, %v220_v12 }
 0x19a   :  { %v263_v15 = vpop.permute.xlu2 %262 }
 0x19b   :  { %v280_v16 = vadd.f32 %v263_v15, %v252_v13 }
 0x19d   :  { %v284_v17 = vmax.f32 %v280_v16, 0.0 }
 0x19f   :  { %288 = vst.msk [vmem:[%s594_s4] sm:$0xff] %vm131_vm0, %v284_v17 }
 0x1a6   :  { %v250_v18 = vpop.permute.xlu2 %249 }
 0x1a7   :  { %v255_v14 = vmul.f32 %v250_v18, %v223_v48 }
 0x1ae   :  { %v273_v22 = vpop.permute.xlu2 %272 }
 0x1b2   :  { %v240_v25 = vpop.permute.xlu0 %239 }
 0x1b3   :  { %v253_v26 = vmul.f32 %v240_v25, %v221_v42 }
 0x1b8   :  { %v245_v20 = vpop.permute.xlu1 %244 }
 0x1b9   :  { %v254_v21 = vmul.f32 %v245_v20, %v222_v19 }
 0x1bb   :  { %v282_v23 = vadd.f32 %v273_v22, %v254_v21 }
 0x1bd   :  { %v286_v2 = vmax.f32 %v282_v23, 0.0 }
 0x1bf   :  { %290 = vst.msk [vmem:[%s594_s4 + $0x10] sm:$0xff] %vm131_vm0, %v286_v2 }
 0x1c0   :  { %v268_v27 = vpop.permute.xlu1 %267 }
 0x1c1   :  { %v281_v28 = vadd.f32 %v268_v27, %v253_v26 }
 0x1c3   :  { %v285_v29 = vmax.f32 %v281_v28, 0.0 }
 0x1c5   :  { %289 = vst.msk [vmem:[%s594_s4 + $0x8] sm:$0xff] %vm131_vm0, %v285_v29 }
 0x1c8   :  { %v278_v51 = vpop.permute.xlu1 %277 }
 0x1c9   :  { %v283_v10 = vadd.f32 %v278_v51, %v255_v14 }
 0x1cb   :  { %v287_v30 = vmax.f32 %v283_v10, 0.0 }
 0x1cd   :  { %291 = vst.msk [vmem:[%s594_s4 + $0x18] sm:$0xff] %vm131_vm0, %v287_v30 }
 0x1ce   :  { %296 = vsyncpa [#allocation3], 1 }

// kernel: generator_forward.5
= control target key start
LH: loop header
LB: loop body
LE: loop exit
PB: predicated region body
PF: predicated region fallthrough
CT: control target
= control target key end

     0   :  { %9 = vsyncpa [#allocation3], 0  ;;  %s292_s18 = smov [#allocation2]   ;;  %s293_s20 = smov 384   ;;  %s470_s0 = inlined_call_operand.hbm [shape: f32[16,288], index: 0, kind: input, shape index: {}]   ;;  %s471_s1 = inlined_call_operand.vmem [shape: f32[288,98], index: 1, kind: input, shape index: {}]   ;;  %s472_s2 = inlined_call_operand.vmem [shape: f32[16,1], index: 2, kind: input, shape index: {}]   ;;  %s473_s3 = inlined_call_operand.vmem [shape: f32[16,1], index: 3, kind: input, shape index: {}]   ;;  %s474_s4 = inlined_call_operand.vmem [shape: f32[16,98], index: 4, kind: output, shape index: {}]  }
   0x1   :  { %s14_s17 = sshll.u32 %s470_s0, 4  ;;  %s16_s19 = sshll.u32 %s292_s18, 4  ;;  %s15_s17 = int_to_ptr.hbm [resolvable:$true] %s14_s17  ;;  %s17_s19 = int_to_ptr.vmem [resolvable:$true] %s16_s19 }
   0x2   :  { %s294_s21 = smov 24  }
   0x3   :  { %22 = dma.hbm_to_vmem [thread:$0]  %s15_s17, 768, %s17_s19, [#allocation3], %s293_s20, %s293_s20, %s294_s21  }
   0x4   :  { %290 = dma.done.wait [#allocation3], 768  }
   0x5   :  { %291 = vsyncadd [#allocation3], 4294966528  ;;  %v54_v0 = vld [vmem:[%s471_s1 + $0x78] sm:$0xff]  ;;  %v53_v2 = vld [vmem:[%s471_s1 + $0x70] sm:$0xff]  ;;  %vm75_vm0 = vcmask 261120   ;;  %vm151_vm1 = vcmask 801792  }
   0x6   :  { %v70_v1 = vld [vmem:[%s471_s1 + $0xf8] sm:$0xff]  ;;  %82 = vmatpush.msra.mxu0 %v54_v0  ;;  %v69_v3 = vld [vmem:[%s471_s1 + $0xf0] sm:$0xff]  ;;  %239 = vmatpush.msra.mxu3 %v54_v0  ;;  %v52_v4 = vld [vmem:[%s471_s1 + $0x68] sm:$0xff]  ;;  %v295_v58 = vmov 0  }
   0x7   :  { %105 = vmatpush.msra.mxu1 %v70_v1  ;;  %v68_v5 = vld [vmem:[%s471_s1 + $0xe8] sm:$0xff]  ;;  %v51_v6 = vld [vmem:[%s471_s1 + $0x60] sm:$0xff]  ;;  %v50_v8 = vld [vmem:[%s471_s1 + $0x58] sm:$0xff]  ;;  %260 = vset.pattern.permute.xlu0 %v295_v58 }
   0x8   :  { %83 = vmatpush.msra.mxu0 %v53_v2  ;;  %240 = vmatpush.msra.mxu3 %v53_v2  ;;  %v67_v7 = vld [vmem:[%s471_s1 + $0xe0] sm:$0xff]  ;;  %v66_v9 = vld [vmem:[%s471_s1 + $0xd8] sm:$0xff]  ;;  %v49_v11 = vld [vmem:[%s471_s1 + $0x50] sm:$0xff] }
   0x9   :  { %106 = vmatpush.msra.mxu1 %v69_v3  ;;  %v74_v10 = vld [vmem:[%s471_s1 + $0x118] sm:$0xff]  ;;  %v65_v12 = vld [vmem:[%s471_s1 + $0xd0] sm:$0xff]  ;;  %v72_v14 = vld [vmem:[%s471_s1 + $0x108] sm:$0xff]  ;;  %261 = vset.pattern.permute.xlu1 %v295_v58 }
   0xa   :  { %84 = vmatpush.msra.mxu0 %v52_v4  ;;  %241 = vmatpush.msra.mxu3 %v52_v4  ;;  %v73_v13 = vld [vmem:[%s471_s1 + $0x110] sm:$0xff]  ;;  %v48_v15 = vld [vmem:[%s471_s1 + $0x48] sm:$0xff]  ;;  %v71_v17 = vld [vmem:[%s471_s1 + $0x100] sm:$0xff] }
   0xb   :  { %107 = vmatpush.msra.mxu1 %v68_v5  ;;  %140 = vmatpush.msra.mxu2 %v74_v10  ;;  %v64_v16 = vld [vmem:[%s471_s1 + $0xc8] sm:$0xff]  ;;  %v47_v18 = vld [vmem:[%s471_s1 + $0x40] sm:$0xff]  ;;  %v35_v20 = vld [vmem:[#allocation2 + $0x10] sm:$0xff] }
   0xc   :  { %85 = vmatpush.msra.mxu0 %v51_v6  ;;  %242 = vmatpush.msra.mxu3 %v51_v6  ;;  %v63_v19 = vld [vmem:[%s471_s1 + $0xc0] sm:$0xff]  ;;  %v46_v21 = vld [vmem:[%s471_s1 + $0x38] sm:$0xff]  ;;  %v45_v23 = vld [vmem:[%s471_s1 + $0x30] sm:$0xff] }
   0xd   :  { %108 = vmatpush.msra.mxu1 %v67_v7  ;;  %141 = vmatpush.msra.mxu2 %v73_v13  ;;  %v62_v22 = vld [vmem:[%s471_s1 + $0xb8] sm:$0xff]  ;;  %v61_v24 = vld [vmem:[%s471_s1 + $0xb0] sm:$0xff]  ;;  %v44_v25 = vld [vmem:[%s471_s1 + $0x28] sm:$0xff] }
   0xe   :  { %86 = vmatpush.msra.mxu0 %v50_v8  ;;  %243 = vmatpush.msra.mxu3 %v50_v8  ;;  %v60_v26 = vld [vmem:[%s471_s1 + $0xa8] sm:$0xff]  ;;  %v43_v27 = vld [vmem:[%s471_s1 + $0x20] sm:$0xff]  ;;  %v42_v30 = vld [vmem:[%s471_s1 + $0x18] sm:$0xff] }
   0xf   :  { %109 = vmatpush.msra.mxu1 %v66_v9  ;;  %142 = vmatpush.msra.mxu2 %v72_v14  ;;  %v59_v28 = vld [vmem:[%s471_s1 + $0xa0] sm:$0xff]  ;;  %v38_v29 = vld [vmem:[#allocation2 + $0x28] sm:$0xff]  ;;  %v58_v31 = vld [vmem:[%s471_s1 + $0x98] sm:$0xff] }
  0x10   :  { %87 = vmatpush.msra.mxu0 %v49_v11  ;;  %244 = vmatpush.msra.mxu3 %v49_v11  ;;  %v41_v32 = vld [vmem:[%s471_s1 + $0x10] sm:$0xff]  ;;  %v40_v34 = vld [vmem:[%s471_s1 + $0x8] sm:$0xff]  ;;  %v39_v36 = vld [vmem:[%s471_s1] sm:$0xff] }
  0x11   :  { %110 = vmatpush.msra.mxu1 %v65_v12  ;;  %143 = vmatpush.msra.mxu2 %v71_v17  ;;  %v57_v33 = vld [vmem:[%s471_s1 + $0x90] sm:$0xff]  ;;  %v56_v35 = vld [vmem:[%s471_s1 + $0x88] sm:$0xff]  ;;  %v55_v37 = vld [vmem:[%s471_s1 + $0x80] sm:$0xff] }
  0x12   :  { %88 = vmatpush.msra.mxu0 %v48_v15  ;;  %245 = vmatpush.msra.mxu3 %v48_v15  ;;  %v33_v38 = vld [vmem:[#allocation2] sm:$0xff]  ;;  %v34_v39 = vld [vmem:[#allocation2 + $0x8] sm:$0xff]  ;;  %v36_v40 = vld [vmem:[#allocation2 + $0x18] sm:$0xff] }
  0x13   :  { %111 = vmatpush.msra.mxu1 %v64_v16  ;;  %237 = vmatmul.msk.f32.vlgmr.msra.gmra.mxu2 %vm75_vm0, %v35_v20  ;;  %v37_v41 = vld [vmem:[#allocation2 + $0x20] sm:$0xff]  ;;  %v215_v60 = vld [vmem:[%s473_s3 + $0x8] sm:$0xff] }
  0x14   :  { %89 = vmatpush.msra.mxu0 %v47_v18  ;;  %246 = vmatpush.msra.mxu3 %v47_v18  ;;  %v214_v59 = vld [vmem:[%s473_s3] sm:$0xff] }
  0x15   :  { %112 = vmatpush.msra.mxu1 %v63_v19  ;;  %259 = vset.pattern.permute.xlu2 %v295_v58  ;;  %v198_v19 = vld [vmem:[%s472_s2] sm:$0xff] }
  0x16   :  { %90 = vmatpush.msra.mxu0 %v46_v21  ;;  %247 = vmatpush.msra.mxu3 %v46_v21 }
  0x17   :  { %113 = vmatpush.msra.mxu1 %v62_v22 }
  0x18   :  { %91 = vmatpush.msra.mxu0 %v45_v23  ;;  %248 = vmatpush.msra.mxu3 %v45_v23 }
  0x19   :  { %114 = vmatpush.msra.mxu1 %v61_v24 }
  0x1a   :  { %92 = vmatpush.msra.mxu0 %v44_v25  ;;  %249 = vmatpush.msra.mxu3 %v44_v25 }
  0x1b   :  { %115 = vmatpush.msra.mxu1 %v60_v26  ;;  %238 = vmatmul.msk.f32.gmra.mxu2 %vm75_vm0, %v38_v29  ;;  %v199_v26 = vld [vmem:[%s472_s2 + $0x8] sm:$0xff] }
  0x1c   :  { %93 = vmatpush.msra.mxu0 %v43_v27  ;;  %250 = vmatpush.msra.mxu3 %v43_v27 }
  0x1d   :  { %116 = vmatpush.msra.mxu1 %v59_v28 }
  0x1e   :  { %94 = vmatpush.msra.mxu0 %v42_v30  ;;  %251 = vmatpush.msra.mxu3 %v42_v30 }
  0x1f   :  { %117 = vmatpush.msra.mxu1 %v58_v31 }
  0x20   :  { %95 = vmatpush.msra.mxu0 %v41_v32  ;;  %252 = vmatpush.msra.mxu3 %v41_v32 }
  0x21   :  { %118 = vmatpush.msra.mxu1 %v57_v33 }
  0x22   :  { %96 = vmatpush.msra.mxu0 %v40_v34  ;;  %253 = vmatpush.msra.mxu3 %v40_v34 }
  0x23   :  { %119 = vmatpush.msra.mxu1 %v56_v35 }
  0x24   :  { %97 = vmatpush.msra.mxu0 %v39_v36  ;;  %254 = vmatpush.msra.mxu3 %v39_v36 }
  0x25   :  { %120 = vmatpush.msra.mxu1 %v55_v37  ;;  %98 = vmatmul.f32.vlgmr.msra.gmra.mxu0 %v33_v38 }
  0x26   :  { %121 = vmatmul.f32.vlgmr.msra.gmra.mxu1 %v34_v39  ;;  %101 = vmatmul.f32.vlgmr.msra.gmra.mxu3 %v36_v40 }
  0x2e   :  { %124 = vmatmul.f32.gmra.mxu1 %v37_v41 }
  0x96   :  { %v145_v42 = vpop.f32.mrf.mxu2 }
  0x9e   :  { %v148_v50 = vpop.f32.mrf.mxu2 }
  0xa2   :  { %v99_v43 = vpop.f32.mrf.mxu0 }
  0xa3   :  { %v122_v44 = vpop.f32.mrf.mxu1 }
  0xa4   :  { %v123_v45 = vadd.f32 %v122_v44, %v99_v43 }
  0xa6   :  { %v434_v46 = vadd.f32 %v145_v42, %v123_v45 }
  0xa8   :  { %v152_v47 = vsel %vm151_vm1, %v434_v46, 0.0  ;;  %v160_v48 = vmul.f32 %v434_v46, %v434_v46 }
  0xa9   :  { %153 = vadd.xlane.f32.xlu0 %v152_v47  ;;  %v102_v51 = vpop.f32.mrf.mxu3 }
  0xaa   :  { %v162_v49 = vsel %vm151_vm1, %v160_v48, 0.0 }
  0xab   :  { %v125_v52 = vpop.f32.mrf.mxu1  ;;  %163 = vadd.xlane.f32.xlu1 %v162_v49 }
  0xac   :  { %v126_v53 = vadd.f32 %v125_v52, %v102_v51 }
  0xae   :  { %v441_v54 = vadd.f32 %v148_v50, %v126_v53 }
  0xb0   :  { %v155_v55 = vsel %vm151_vm1, %v441_v54, 0.0  ;;  %v161_v56 = vmul.f32 %v441_v54, %v441_v54 }
  0xb1   :  { %156 = vadd.xlane.f32.xlu0 %v155_v55 }
  0xb2   :  { %v165_v57 = vsel %vm151_vm1, %v161_v56, 0.0 }
  0xb3   :  { %166 = vadd.xlane.f32.xlu1 %v165_v57 }
  0xc5   :  { %218 = vperm.xlu0 %260, %v214_v59  }
  0xcc   :  { %223 = vperm.xlu1 %261, %v215_v60  }
 0x11c   :  { %v154_v61 = vpop.xlane.xlu0 %153 }
 0x11d   :  { %v158_v62 = vmul.f32 0.010204081, %v154_v61 }
 0x11e   :  { %v164_v63 = vpop.xlane.xlu1 %163 }
 0x11f   :  { %v170_v0 = vmul.f32 %v158_v62, %v158_v62  ;;  %v168_v1 = vmul.f32 0.010204081, %v164_v63  ;;  %v196_v29 = vsub.f32 %v434_v46, %v158_v62 }
 0x121   :  { %v172_v2 = vsub.f32 %v168_v1, %v170_v0 }
 0x123   :  { %v174_v3 = vadd.f32 1e-05, %v172_v2 }
 0x124   :  { %v157_v4 = vpop.xlane.xlu0 %156 }
 0x125   :  { %262 = vrsqrt.f32 %v174_v3  ;;  %v159_v5 = vmul.f32 0.010204081, %v157_v4  ;;  %vm182_vm3 = vweird.f32 %v174_v3 }
 0x126   :  { %v167_v6 = vpop.xlane.xlu1 %166 }
 0x127   :  { %v171_v7 = vmul.f32 %v159_v5, %v159_v5  ;;  %v169_v8 = vmul.f32 0.010204081, %v167_v6  ;;  %v197_v35 = vsub.f32 %v441_v54, %v159_v5 }
 0x129   :  { %v173_v9 = vsub.f32 %v169_v8, %v171_v7 }
 0x12b   :  { %v263_v10 = vpop.eup %262  ;;  %v175_v11 = vadd.f32 1e-05, %v173_v9 }
 0x12c   :  { %v177_v12 = vmul.f32 %v263_v10, %v174_v3  ;;  %vm183_vm2 = vweird.f32 %v263_v10 }
 0x12d   :  { %264 = vrsqrt.f32 %v175_v11  ;;  %vm184_vm4 = vmor %vm182_vm3, %vm183_vm2  ;;  %vm192_vm6 = vweird.f32 %v175_v11 }
 0x12e   :  { %v178_v13 = vmul.f32 %v263_v10, %v177_v12 }
 0x130   :  { %v179_v14 = vmul.f32 0.5, %v178_v13 }
 0x132   :  { %v180_v15 = vsub.f32 1.5, %v179_v14 }
 0x133   :  { %v265_v16 = vpop.eup %264 }
 0x134   :  { %v187_v17 = vmul.f32 %v265_v16, %v175_v11  ;;  %v181_v18 = vmul.f32 %v263_v10, %v180_v15  ;;  %vm193_vm5 = vweird.f32 %v265_v16 }
 0x135   :  { %vm194_vm7 = vmor %vm192_vm6, %vm193_vm5 }
 0x136   :  { %v188_v20 = vmul.f32 %v265_v16, %v187_v17  ;;  %v185_v21 = vsel %vm184_vm4, %v263_v10, %v181_v18 }
 0x137   :  { %v200_v22 = vmul.f32 %v198_v19, %v185_v21  ;;  %v219_v31 = vpop.permute.xlu0 %218 }
 0x138   :  { %v189_v23 = vmul.f32 0.5, %v188_v20 }
 0x139   :  { %204 = vperm.xlu2 %259, %v200_v22  }
 0x13a   :  { %v190_v24 = vsub.f32 1.5, %v189_v23 }
 0x13c   :  { %v191_v25 = vmul.f32 %v265_v16, %v190_v24 }
 0x13e   :  { %v195_v27 = vsel %vm194_vm7, %v265_v16, %v191_v25  ;;  %v224_v37 = vpop.permute.xlu1 %223 }
 0x13f   :  { %v201_v28 = vmul.f32 %v199_v26, %v195_v27 }
 0x141   :  { %209 = vperm.xlu2 %259, %v201_v28  }
 0x193   :  { %v205_v30 = vpop.permute.xlu2 %204 }
 0x194   :  { %v212_v32 = vmul.f32 %v205_v30, %v196_v29 }
 0x196   :  { %v226_v33 = vadd.f32 %v219_v31, %v212_v32 }
 0x198   :  { %v228_v34 = vmax.f32 %v226_v33, 0.0 }
 0x19a   :  { %230 = vst.msk [vmem:[%s474_s4] sm:$0xff] %vm151_vm1, %v228_v34 }
 0x19b   :  { %v210_v36 = vpop.permute.xlu2 %209 }
 0x19c   :  { %v213_v38 = vmul.f32 %v210_v36, %v197_v35 }
 0x19e   :  { %v227_v39 = vadd.f32 %v224_v37, %v213_v38 }
 0x1a0   :  { %v229_v40 = vmax.f32 %v227_v39, 0.0 }
 0x1a2   :  { %231 = vst.msk [vmem:[%s474_s4 + $0x8] sm:$0xff] %vm151_vm1, %v229_v40 }
 0x1a3   :  { %236 = vsyncpa [#allocation3], 1 }

// kernel: generator_forward.6
= control target key start
LH: loop header
LB: loop body
LE: loop exit
PB: predicated region body
PF: predicated region fallthrough
CT: control target
= control target key end

     0   :  { %vm309_vm0 = vcmask 64512   ;;  %s818_s1 = inlined_call_operand.vmem [shape: f32[256,392], index: 1, kind: input, shape index: {}]   ;;  %s819_s0 = inlined_call_operand.vmem [shape: f32[8,256], index: 0, kind: input, shape index: {}]   ;;  %s820_s2 = inlined_call_operand.vmem [shape: f32[8,1], index: 2, kind: input, shape index: {}]   ;;  %s821_s3 = inlined_call_operand.vmem [shape: f32[8,1], index: 3, kind: input, shape index: {}]   ;;  %s822_s4 = inlined_call_operand.vmem [shape: f32[8,392], index: 4, kind: output, shape index: {}]  }
   0x1   :  { %v79_v0 = vld [vmem:[%s818_s1 + $0x1e0] sm:$0xff]  ;;  %v80_v2 = vld [vmem:[%s818_s1 + $0x1e8] sm:$0xff] }
   0x2   :  { %v143_v1 = vld [vmem:[%s818_s1 + $0x3e0] sm:$0xff]  ;;  %147 = vmatpush.msra.mxu0 %v79_v0  ;;  %v144_v3 = vld [vmem:[%s818_s1 + $0x3e8] sm:$0xff]  ;;  %187 = vmatpush.msra.mxu2 %v80_v2  ;;  %v81_v0 = vld [vmem:[%s818_s1 + $0x1f0] sm:$0xff] }
   0x3   :  { %167 = vmatpush.msra.mxu1 %v143_v1  ;;  %v75_v4 = vld [vmem:[%s818_s1 + $0x1c0] sm:$0xff]  ;;  %207 = vmatpush.msra.mxu3 %v144_v3  ;;  %v76_v6 = vld [vmem:[%s818_s1 + $0x1c8] sm:$0xff]  ;;  %v145_v1 = vld [vmem:[%s818_s1 + $0x3f0] sm:$0xff] }
   0x4   :  { %v139_v5 = vld [vmem:[%s818_s1 + $0x3c0] sm:$0xff]  ;;  %v140_v7 = vld [vmem:[%s818_s1 + $0x3c8] sm:$0xff]  ;;  %148 = vmatpush.msra.mxu0 %v75_v4  ;;  %188 = vmatpush.msra.mxu2 %v76_v6  ;;  %v82_v2 = vld [vmem:[%s818_s1 + $0x1f8] sm:$0xff] }
   0x5   :  { %v71_v8 = vld [vmem:[%s818_s1 + $0x1a0] sm:$0xff]  ;;  %168 = vmatpush.msra.mxu1 %v139_v5  ;;  %v72_v10 = vld [vmem:[%s818_s1 + $0x1a8] sm:$0xff]  ;;  %208 = vmatpush.msra.mxu3 %v140_v7  ;;  %v146_v3 = vld [vmem:[%s818_s1 + $0x3f8] sm:$0xff] }
   0x6   :  { %v135_v9 = vld [vmem:[%s818_s1 + $0x3a0] sm:$0xff]  ;;  %v136_v11 = vld [vmem:[%s818_s1 + $0x3a8] sm:$0xff]  ;;  %149 = vmatpush.msra.mxu0 %v71_v8  ;;  %189 = vmatpush.msra.mxu2 %v72_v10  ;;  %v77_v4 = vld [vmem:[%s818_s1 + $0x1d0] sm:$0xff] }
   0x7   :  { %v67_v12 = vld [vmem:[%s818_s1 + $0x180] sm:$0xff]  ;;  %169 = vmatpush.msra.mxu1 %v135_v9  ;;  %v68_v14 = vld [vmem:[%s818_s1 + $0x188] sm:$0xff]  ;;  %209 = vmatpush.msra.mxu3 %v136_v11  ;;  %v141_v5 = vld [vmem:[%s818_s1 + $0x3d0] sm:$0xff] }
   0x8   :  { %v131_v13 = vld [vmem:[%s818_s1 + $0x380] sm:$0xff]  ;;  %v132_v15 = vld [vmem:[%s818_s1 + $0x388] sm:$0xff]  ;;  %150 = vmatpush.msra.mxu0 %v67_v12  ;;  %190 = vmatpush.msra.mxu2 %v68_v14  ;;  %v78_v6 = vld [vmem:[%s818_s1 + $0x1d8] sm:$0xff] }
   0x9   :  { %v63_v16 = vld [vmem:[%s818_s1 + $0x160] sm:$0xff]  ;;  %170 = vmatpush.msra.mxu1 %v131_v13  ;;  %v64_v18 = vld [vmem:[%s818_s1 + $0x168] sm:$0xff]  ;;  %210 = vmatpush.msra.mxu3 %v132_v15  ;;  %v142_v7 = vld [vmem:[%s818_s1 + $0x3d8] sm:$0xff] }
   0xa   :  { %v127_v17 = vld [vmem:[%s818_s1 + $0x360] sm:$0xff]  ;;  %v128_v19 = vld [vmem:[%s818_s1 + $0x368] sm:$0xff]  ;;  %151 = vmatpush.msra.mxu0 %v63_v16  ;;  %191 = vmatpush.msra.mxu2 %v64_v18  ;;  %v73_v8 = vld [vmem:[%s818_s1 + $0x1b0] sm:$0xff] }
   0xb   :  { %v59_v20 = vld [vmem:[%s818_s1 + $0x140] sm:$0xff]  ;;  %171 = vmatpush.msra.mxu1 %v127_v17  ;;  %v60_v22 = vld [vmem:[%s818_s1 + $0x148] sm:$0xff]  ;;  %211 = vmatpush.msra.mxu3 %v128_v19  ;;  %v137_v9 = vld [vmem:[%s818_s1 + $0x3b0] sm:$0xff] }
   0xc   :  { %v123_v21 = vld [vmem:[%s818_s1 + $0x340] sm:$0xff]  ;;  %v124_v23 = vld [vmem:[%s818_s1 + $0x348] sm:$0xff]  ;;  %152 = vmatpush.msra.mxu0 %v59_v20  ;;  %192 = vmatpush.msra.mxu2 %v60_v22  ;;  %v74_v10 = vld [vmem:[%s818_s1 + $0x1b8] sm:$0xff] }
   0xd   :  { %v55_v24 = vld [vmem:[%s818_s1 + $0x120] sm:$0xff]  ;;  %172 = vmatpush.msra.mxu1 %v123_v21  ;;  %v56_v26 = vld [vmem:[%s818_s1 + $0x128] sm:$0xff]  ;;  %212 = vmatpush.msra.mxu3 %v124_v23  ;;  %v138_v11 = vld [vmem:[%s818_s1 + $0x3b8] sm:$0xff] }
   0xe   :  { %v119_v25 = vld [vmem:[%s818_s1 + $0x320] sm:$0xff]  ;;  %v120_v27 = vld [vmem:[%s818_s1 + $0x328] sm:$0xff]  ;;  %153 = vmatpush.msra.mxu0 %v55_v24  ;;  %193 = vmatpush.msra.mxu2 %v56_v26  ;;  %v69_v12 = vld [vmem:[%s818_s1 + $0x190] sm:$0xff] }
   0xf   :  { %v51_v28 = vld [vmem:[%s818_s1 + $0x100] sm:$0xff]  ;;  %173 = vmatpush.msra.mxu1 %v119_v25  ;;  %v52_v30 = vld [vmem:[%s818_s1 + $0x108] sm:$0xff]  ;;  %213 = vmatpush.msra.mxu3 %v120_v27  ;;  %v133_v13 = vld [vmem:[%s818_s1 + $0x390] sm:$0xff] }
  0x10   :  { %v115_v29 = vld [vmem:[%s818_s1 + $0x300] sm:$0xff]  ;;  %v116_v31 = vld [vmem:[%s818_s1 + $0x308] sm:$0xff]  ;;  %154 = vmatpush.msra.mxu0 %v51_v28  ;;  %194 = vmatpush.msra.mxu2 %v52_v30  ;;  %v70_v14 = vld [vmem:[%s818_s1 + $0x198] sm:$0xff] }
  0x11   :  { %v47_v32 = vld [vmem:[%s818_s1 + $0xe0] sm:$0xff]  ;;  %174 = vmatpush.msra.mxu1 %v115_v29  ;;  %v48_v34 = vld [vmem:[%s818_s1 + $0xe8] sm:$0xff]  ;;  %214 = vmatpush.msra.mxu3 %v116_v31  ;;  %v134_v15 = vld [vmem:[%s818_s1 + $0x398] sm:$0xff] }
  0x12   :  { %v111_v33 = vld [vmem:[%s818_s1 + $0x2e0] sm:$0xff]  ;;  %v112_v35 = vld [vmem:[%s818_s1 + $0x2e8] sm:$0xff]  ;;  %155 = vmatpush.msra.mxu0 %v47_v32  ;;  %195 = vmatpush.msra.mxu2 %v48_v34  ;;  %v65_v16 = vld [vmem:[%s818_s1 + $0x170] sm:$0xff] }
  0x13   :  { %v43_v36 = vld [vmem:[%s818_s1 + $0xc0] sm:$0xff]  ;;  %175 = vmatpush.msra.mxu1 %v111_v33  ;;  %v44_v38 = vld [vmem:[%s818_s1 + $0xc8] sm:$0xff]  ;;  %215 = vmatpush.msra.mxu3 %v112_v35  ;;  %v129_v17 = vld [vmem:[%s818_s1 + $0x370] sm:$0xff] }
  0x14   :  { %v107_v37 = vld [vmem:[%s818_s1 + $0x2c0] sm:$0xff]  ;;  %v108_v39 = vld [vmem:[%s818_s1 + $0x2c8] sm:$0xff]  ;;  %156 = vmatpush.msra.mxu0 %v43_v36  ;;  %196 = vmatpush.msra.mxu2 %v44_v38  ;;  %v66_v18 = vld [vmem:[%s818_s1 + $0x178] sm:$0xff] }
  0x15   :  { %v39_v40 = vld [vmem:[%s818_s1 + $0xa0] sm:$0xff]  ;;  %176 = vmatpush.msra.mxu1 %v107_v37  ;;  %v40_v42 = vld [vmem:[%s818_s1 + $0xa8] sm:$0xff]  ;;  %216 = vmatpush.msra.mxu3 %v108_v39  ;;  %v130_v19 = vld [vmem:[%s818_s1 + $0x378] sm:$0xff] }
  0x16   :  { %v103_v41 = vld [vmem:[%s818_s1 + $0x2a0] sm:$0xff]  ;;  %v104_v43 = vld [vmem:[%s818_s1 + $0x2a8] sm:$0xff]  ;;  %157 = vmatpush.msra.mxu0 %v39_v40  ;;  %197 = vmatpush.msra.mxu2 %v40_v42  ;;  %v61_v20 = vld [vmem:[%s818_s1 + $0x150] sm:$0xff] }
  0x17   :  { %v35_v44 = vld [vmem:[%s818_s1 + $0x80] sm:$0xff]  ;;  %177 = vmatpush.msra.mxu1 %v103_v41  ;;  %v36_v46 = vld [vmem:[%s818_s1 + $0x88] sm:$0xff]  ;;  %217 = vmatpush.msra.mxu3 %v104_v43  ;;  %v125_v21 = vld [vmem:[%s818_s1 + $0x350] sm:$0xff] }
  0x18   :  { %v99_v45 = vld [vmem:[%s818_s1 + $0x280] sm:$0xff]  ;;  %v100_v47 = vld [vmem:[%s818_s1 + $0x288] sm:$0xff]  ;;  %158 = vmatpush.msra.mxu0 %v35_v44  ;;  %198 = vmatpush.msra.mxu2 %v36_v46  ;;  %v62_v22 = vld [vmem:[%s818_s1 + $0x158] sm:$0xff] }
  0x19   :  { %v31_v48 = vld [vmem:[%s818_s1 + $0x60] sm:$0xff]  ;;  %178 = vmatpush.msra.mxu1 %v99_v45  ;;  %v32_v50 = vld [vmem:[%s818_s1 + $0x68] sm:$0xff]  ;;  %218 = vmatpush.msra.mxu3 %v100_v47  ;;  %v126_v23 = vld [vmem:[%s818_s1 + $0x358] sm:$0xff] }
  0x1a   :  { %v95_v49 = vld [vmem:[%s818_s1 + $0x260] sm:$0xff]  ;;  %v96_v51 = vld [vmem:[%s818_s1 + $0x268] sm:$0xff]  ;;  %159 = vmatpush.msra.mxu0 %v31_v48  ;;  %199 = vmatpush.msra.mxu2 %v32_v50  ;;  %v57_v24 = vld [vmem:[%s818_s1 + $0x130] sm:$0xff] }
  0x1b   :  { %v27_v52 = vld [vmem:[%s818_s1 + $0x40] sm:$0xff]  ;;  %179 = vmatpush.msra.mxu1 %v95_v49  ;;  %v28_v54 = vld [vmem:[%s818_s1 + $0x48] sm:$0xff]  ;;  %219 = vmatpush.msra.mxu3 %v96_v51  ;;  %v121_v25 = vld [vmem:[%s818_s1 + $0x330] sm:$0xff] }
  0x1c   :  { %v91_v53 = vld [vmem:[%s818_s1 + $0x240] sm:$0xff]  ;;  %v92_v55 = vld [vmem:[%s818_s1 + $0x248] sm:$0xff]  ;;  %160 = vmatpush.msra.mxu0 %v27_v52  ;;  %200 = vmatpush.msra.mxu2 %v28_v54  ;;  %v58_v26 = vld [vmem:[%s818_s1 + $0x138] sm:$0xff] }
  0x1d   :  { %v23_v56 = vld [vmem:[%s818_s1 + $0x20] sm:$0xff]  ;;  %180 = vmatpush.msra.mxu1 %v91_v53  ;;  %v24_v58 = vld [vmem:[%s818_s1 + $0x28] sm:$0xff]  ;;  %220 = vmatpush.msra.mxu3 %v92_v55  ;;  %v122_v27 = vld [vmem:[%s818_s1 + $0x338] sm:$0xff] }
  0x1e   :  { %v87_v57 = vld [vmem:[%s818_s1 + $0x220] sm:$0xff]  ;;  %v88_v59 = vld [vmem:[%s818_s1 + $0x228] sm:$0xff]  ;;  %161 = vmatpush.msra.mxu0 %v23_v56  ;;  %201 = vmatpush.msra.mxu2 %v24_v58  ;;  %v53_v28 = vld [vmem:[%s818_s1 + $0x110] sm:$0xff] }
  0x1f   :  { %v19_v60 = vld [vmem:[%s818_s1] sm:$0xff]  ;;  %181 = vmatpush.msra.mxu1 %v87_v57  ;;  %v20_v62 = vld [vmem:[%s818_s1 + $0x8] sm:$0xff]  ;;  %221 = vmatpush.msra.mxu3 %v88_v59  ;;  %v117_v29 = vld [vmem:[%s818_s1 + $0x310] sm:$0xff] }
  0x20   :  { %v83_v61 = vld [vmem:[%s818_s1 + $0x200] sm:$0xff]  ;;  %v84_v63 = vld [vmem:[%s818_s1 + $0x208] sm:$0xff]  ;;  %162 = vmatpush.msra.mxu0 %v19_v60  ;;  %202 = vmatpush.msra.mxu2 %v20_v62  ;;  %v54_v30 = vld [vmem:[%s818_s1 + $0x118] sm:$0xff] }
  0x21   :  { %182 = vmatpush.msra.mxu1 %v83_v61  ;;  %222 = vmatpush.msra.mxu3 %v84_v63  ;;  %v118_v31 = vld [vmem:[%s818_s1 + $0x318] sm:$0xff]  ;;  %v49_v32 = vld [vmem:[%s818_s1 + $0xf0] sm:$0xff]  ;;  %v17_v44 = vld [vmem:[%s819_s0] sm:$0xff] }
  0x22   :  { %227 = vmatpush.msrb.mxu0 %v81_v0  ;;  %267 = vmatpush.msrb.mxu2 %v82_v2  ;;  %v113_v33 = vld [vmem:[%s818_s1 + $0x2f0] sm:$0xff]  ;;  %v50_v34 = vld [vmem:[%s818_s1 + $0xf8] sm:$0xff]  ;;  %v18_v45 = vld [vmem:[%s819_s0 + $0x8] sm:$0xff] }
  0x23   :  { %247 = vmatpush.msrb.mxu1 %v145_v1  ;;  %287 = vmatpush.msrb.mxu3 %v146_v3  ;;  %v114_v35 = vld [vmem:[%s818_s1 + $0x2f8] sm:$0xff]  ;;  %v45_v36 = vld [vmem:[%s818_s1 + $0xd0] sm:$0xff] }
  0x24   :  { %228 = vmatpush.msrb.mxu0 %v77_v4  ;;  %268 = vmatpush.msrb.mxu2 %v78_v6  ;;  %v109_v37 = vld [vmem:[%s818_s1 + $0x2d0] sm:$0xff]  ;;  %v46_v38 = vld [vmem:[%s818_s1 + $0xd8] sm:$0xff] }
  0x25   :  { %248 = vmatpush.msrb.mxu1 %v141_v5  ;;  %288 = vmatpush.msrb.mxu3 %v142_v7  ;;  %v110_v39 = vld [vmem:[%s818_s1 + $0x2d8] sm:$0xff]  ;;  %v41_v40 = vld [vmem:[%s818_s1 + $0xb0] sm:$0xff] }
  0x26   :  { %229 = vmatpush.msrb.mxu0 %v73_v8  ;;  %269 = vmatpush.msrb.mxu2 %v74_v10  ;;  %v105_v41 = vld [vmem:[%s818_s1 + $0x2b0] sm:$0xff]  ;;  %v42_v42 = vld [vmem:[%s818_s1 + $0xb8] sm:$0xff] }
  0x27   :  { %249 = vmatpush.msrb.mxu1 %v137_v9  ;;  %289 = vmatpush.msrb.mxu3 %v138_v11  ;;  %v106_v43 = vld [vmem:[%s818_s1 + $0x2b8] sm:$0xff]  ;;  %v37_v46 = vld [vmem:[%s818_s1 + $0x90] sm:$0xff] }
  0x28   :  { %230 = vmatpush.msrb.mxu0 %v69_v12  ;;  %270 = vmatpush.msrb.mxu2 %v70_v14  ;;  %v101_v47 = vld [vmem:[%s818_s1 + $0x290] sm:$0xff]  ;;  %v38_v48 = vld [vmem:[%s818_s1 + $0x98] sm:$0xff] }
  0x29   :  { %250 = vmatpush.msrb.mxu1 %v133_v13  ;;  %290 = vmatpush.msrb.mxu3 %v134_v15  ;;  %v102_v49 = vld [vmem:[%s818_s1 + $0x298] sm:$0xff]  ;;  %v33_v50 = vld [vmem:[%s818_s1 + $0x70] sm:$0xff] }
  0x2a   :  { %231 = vmatpush.msrb.mxu0 %v65_v16  ;;  %271 = vmatpush.msrb.mxu2 %v66_v18  ;;  %v97_v51 = vld [vmem:[%s818_s1 + $0x270] sm:$0xff]  ;;  %v34_v52 = vld [vmem:[%s818_s1 + $0x78] sm:$0xff] }
  0x2b   :  { %251 = vmatpush.msrb.mxu1 %v129_v17  ;;  %291 = vmatpush.msrb.mxu3 %v130_v19  ;;  %v98_v53 = vld [vmem:[%s818_s1 + $0x278] sm:$0xff]  ;;  %v29_v54 = vld [vmem:[%s818_s1 + $0x50] sm:$0xff] }
  0x2c   :  { %232 = vmatpush.msrb.mxu0 %v61_v20  ;;  %272 = vmatpush.msrb.mxu2 %v62_v22  ;;  %v93_v55 = vld [vmem:[%s818_s1 + $0x250] sm:$0xff]  ;;  %v30_v56 = vld [vmem:[%s818_s1 + $0x58] sm:$0xff] }
  0x2d   :  { %252 = vmatpush.msrb.mxu1 %v125_v21  ;;  %292 = vmatpush.msrb.mxu3 %v126_v23  ;;  %v94_v57 = vld [vmem:[%s818_s1 + $0x258] sm:$0xff]  ;;  %v25_v58 = vld [vmem:[%s818_s1 + $0x30] sm:$0xff] }
  0x2e   :  { %233 = vmatpush.msrb.mxu0 %v57_v24  ;;  %273 = vmatpush.msrb.mxu2 %v58_v26  ;;  %v89_v59 = vld [vmem:[%s818_s1 + $0x230] sm:$0xff]  ;;  %v26_v60 = vld [vmem:[%s818_s1 + $0x38] sm:$0xff]  ;;  %v381_v26 = vmov 0  }
  0x2f   :  { %253 = vmatpush.msrb.mxu1 %v121_v25  ;;  %293 = vmatpush.msrb.mxu3 %v122_v27  ;;  %v90_v61 = vld [vmem:[%s818_s1 + $0x238] sm:$0xff]  ;;  %v21_v62 = vld [vmem:[%s818_s1 + $0x10] sm:$0xff] }
  0x30   :  { %234 = vmatpush.msrb.mxu0 %v53_v28  ;;  %274 = vmatpush.msrb.mxu2 %v54_v30  ;;  %v85_v63 = vld [vmem:[%s818_s1 + $0x210] sm:$0xff]  ;;  %v22_v0 = vld [vmem:[%s818_s1 + $0x18] sm:$0xff] }
  0x31   :  { %254 = vmatpush.msrb.mxu1 %v117_v29  ;;  %294 = vmatpush.msrb.mxu3 %v118_v31  ;;  %v86_v1 = vld [vmem:[%s818_s1 + $0x218] sm:$0xff] }
  0x32   :  { %235 = vmatpush.msrb.mxu0 %v49_v32  ;;  %275 = vmatpush.msrb.mxu2 %v50_v34 }
  0x33   :  { %255 = vmatpush.msrb.mxu1 %v113_v33  ;;  %295 = vmatpush.msrb.mxu3 %v114_v35 }
  0x34   :  { %236 = vmatpush.msrb.mxu0 %v45_v36  ;;  %276 = vmatpush.msrb.mxu2 %v46_v38 }
  0x35   :  { %256 = vmatpush.msrb.mxu1 %v109_v37  ;;  %296 = vmatpush.msrb.mxu3 %v110_v39 }
  0x36   :  { %237 = vmatpush.msrb.mxu0 %v41_v40  ;;  %277 = vmatpush.msrb.mxu2 %v42_v42  ;;  %v343_v40 = vld [vmem:[%s820_s2] sm:$0xff] }
  0x37   :  { %257 = vmatpush.msrb.mxu1 %v105_v41  ;;  %297 = vmatpush.msrb.mxu3 %v106_v43  ;;  %v354_v43 = vld [vmem:[%s821_s3] sm:$0xff] }
  0x38   :  { %203 = vmatmul.f32.vlgmr.msra.gmra.mxu2 %v17_v44  ;;  %223 = vmatmul.f32.vlgmr.msra.gmra.mxu3 %v18_v45 }
  0x39   :  { %238 = vmatpush.msrb.mxu0 %v37_v46  ;;  %258 = vmatpush.msrb.mxu1 %v101_v47 }
  0x3a   :  { %278 = vmatpush.msrb.mxu2 %v38_v48  ;;  %298 = vmatpush.msrb.mxu3 %v102_v49 }
  0x3b   :  { %163 = vmatmul.f32.vlgmr.msra.gmra.mxu0 %v17_v44  ;;  %183 = vmatmul.f32.vlgmr.msra.gmra.mxu1 %v18_v45 }
  0x3c   :  { %239 = vmatpush.msrb.mxu0 %v33_v50  ;;  %259 = vmatpush.msrb.mxu1 %v97_v51 }
  0x3d   :  { %279 = vmatpush.msrb.mxu2 %v34_v52  ;;  %299 = vmatpush.msrb.mxu3 %v98_v53 }
  0x3e   :  { %240 = vmatpush.msrb.mxu0 %v29_v54  ;;  %260 = vmatpush.msrb.mxu1 %v93_v55 }
  0x3f   :  { %280 = vmatpush.msrb.mxu2 %v30_v56  ;;  %300 = vmatpush.msrb.mxu3 %v94_v57 }
  0x40   :  { %241 = vmatpush.msrb.mxu0 %v25_v58  ;;  %261 = vmatpush.msrb.mxu1 %v89_v59 }
  0x41   :  { %281 = vmatpush.msrb.mxu2 %v26_v60  ;;  %301 = vmatpush.msrb.mxu3 %v90_v61 }
  0x42   :  { %242 = vmatpush.msrb.mxu0 %v21_v62  ;;  %262 = vmatpush.msrb.mxu1 %v85_v63 }
  0x43   :  { %282 = vmatpush.msrb.mxu2 %v22_v0  ;;  %302 = vmatpush.msrb.mxu3 %v86_v1 }
  0x44   :  { %243 = vmatmul.f32.vlgmr.msrb.gmra.mxu0 %v17_v44  ;;  %263 = vmatmul.f32.vlgmr.msrb.gmra.mxu1 %v18_v45 }
  0x45   :  { %283 = vmatmul.f32.vlgmr.msrb.gmra.mxu2 %v17_v44  ;;  %303 = vmatmul.f32.vlgmr.msrb.gmra.mxu3 %v18_v45 }
  0x46   :  { %377 = vset.pattern.permute.xlu1 %v381_v26  ;;  %378 = vset.pattern.permute.xlu0 %v381_v26 }
  0xb8   :  { %v164_v2 = vpop.f32.mrf.mxu0  ;;  %v184_v3 = vpop.f32.mrf.mxu1 }
  0xb9   :  { %v185_v6 = vadd.f32 %v184_v3, %v164_v2 }
  0xbb   :  { %v204_v4 = vpop.f32.mrf.mxu2  ;;  %v224_v5 = vpop.f32.mrf.mxu3  ;;  %v315_v15 = vmul.f32 %v185_v6, %v185_v6 }
  0xbc   :  { %v225_v7 = vadd.f32 %v224_v5, %v204_v4 }
  0xbe   :  { %v307_v11 = vadd.f32 %v225_v7, %v185_v6  ;;  %v316_v16 = vmul.f32 %v225_v7, %v225_v7 }
  0xc0   :  { %v319_v22 = vadd.f32 %v316_v16, %v315_v15 }
  0xc1   :  { %v244_v8 = vpop.f32.mrf.mxu0  ;;  %v264_v9 = vpop.f32.mrf.mxu1 }
  0xc2   :  { %v265_v10 = vadd.f32 %v264_v9, %v244_v8 }
  0xc4   :  { %v308_v17 = vadd.f32 %v307_v11, %v265_v10  ;;  %v317_v21 = vmul.f32 %v265_v10, %v265_v10 }
  0xc6   :  { %v320_v24 = vadd.f32 %v319_v22, %v317_v21 }
  0xc8   :  { %v284_v12 = vpop.f32.mrf.mxu2  ;;  %v304_v13 = vpop.f32.mrf.mxu3 }
  0xc9   :  { %v305_v14 = vadd.f32 %v304_v13, %v284_v12 }
  0xcb   :  { %v310_v18 = vsel %vm309_vm0, %v305_v14, 0.0  ;;  %v318_v20 = vmul.f32 %v305_v14, %v305_v14 }
  0xcc   :  { %v311_v19 = vadd.f32 %v310_v18, %v308_v17 }
  0xcd   :  { %v321_v23 = vsel %vm309_vm0, %v318_v20, 0.0 }
  0xce   :  { %312 = vadd.xlane.f32.xlu0 %v311_v19  ;;  %v322_v25 = vadd.f32 %v321_v23, %v320_v24 }
  0xd6   :  { %323 = vadd.xlane.f32.xlu0 %v322_v25 }
 0x141   :  { %v313_v27 = vpop.xlane.xlu0 %312 }
 0x142   :  { %v314_v28 = vmul.f32 0.0025510204, %v313_v27 }
 0x144   :  { %v326_v30 = vmul.f32 %v314_v28, %v314_v28  ;;  %v339_v45 = vsub.f32 %v185_v6, %v314_v28  ;;  %v340_v46 = vsub.f32 %v225_v7, %v314_v28  ;;  %v341_v47 = vsub.f32 %v265_v10, %v314_v28 }
 0x145   :  { %v342_v48 = vsub.f32 %v305_v14, %v314_v28 }
 0x149   :  { %v324_v29 = vpop.xlane.xlu0 %323 }
 0x14a   :  { %v325_v31 = vmul.f32 0.0025510204, %v324_v29 }
 0x14c   :  { %v327_v32 = vsub.f32 %v325_v31, %v326_v30 }
 0x14e   :  { %v328_v33 = vadd.f32 1e-05, %v327_v32 }
 0x150   :  { %379 = vrsqrt.f32 %v328_v33  ;;  %vm335_vm2 = vweird.f32 %v328_v33 }
 0x156   :  { %v380_v34 = vpop.eup %379 }
 0x157   :  { %v330_v35 = vmul.f32 %v380_v34, %v328_v33  ;;  %vm336_vm1 = vweird.f32 %v380_v34 }
 0x158   :  { %vm337_vm3 = vmor %vm335_vm2, %vm336_vm1 }
 0x159   :  { %v331_v36 = vmul.f32 %v380_v34, %v330_v35 }
 0x15b   :  { %v332_v37 = vmul.f32 0.5, %v331_v36 }
 0x15d   :  { %v333_v38 = vsub.f32 1.5, %v332_v37 }
 0x15f   :  { %v334_v39 = vmul.f32 %v380_v34, %v333_v38 }
 0x161   :  { %v338_v41 = vsel %vm337_vm3, %v380_v34, %v334_v39 }
 0x162   :  { %v344_v42 = vmul.f32 %v343_v40, %v338_v41 }
 0x164   :  { %347 = vperm.xlu1 %377, %v344_v42  }
 0x16c   :  { %357 = vperm.xlu1 %377, %v354_v43  }
 0x1d6   :  { %v348_v44 = vpop.permute.xlu1 %347 }
 0x1d7   :  { %v350_v49 = vmul.f32 %v348_v44, %v339_v45  ;;  %v351_v50 = vmul.f32 %v348_v44, %v340_v46  ;;  %v352_v51 = vmul.f32 %v348_v44, %v341_v47  ;;  %v353_v52 = vmul.f32 %v348_v44, %v342_v48 }
 0x1de   :  { %v358_v53 = vpop.permute.xlu1 %357 }
 0x1df   :  { %v360_v54 = vadd.f32 %v358_v53, %v350_v49  ;;  %v361_v55 = vadd.f32 %v358_v53, %v351_v50  ;;  %v362_v56 = vadd.f32 %v358_v53, %v352_v51  ;;  %v363_v57 = vadd.f32 %v358_v53, %v353_v52 }
 0x1e1   :  { %v364_v58 = vmax.f32 %v360_v54, 0.0  ;;  %v365_v59 = vmax.f32 %v361_v55, 0.0  ;;  %v366_v60 = vmax.f32 %v362_v56, 0.0  ;;  %v367_v61 = vmax.f32 %v363_v57, 0.0 }
 0x1e3   :  { %368 = vst [vmem:[%s822_s4] sm:$0xff] %v364_v58 }
 0x1e4   :  { %369 = vst [vmem:[%s822_s4 + $0x8] sm:$0xff] %v365_v59 }
 0x1e5   :  { %370 = vst [vmem:[%s822_s4 + $0x10] sm:$0xff] %v366_v60 }
 0x1e6   :  { %371 = vst.msk [vmem:[%s822_s4 + $0x18] sm:$0xff] %vm309_vm0, %v367_v61 }

// kernel: generator_forward.7
= control target key start
LH: loop header
LB: loop body
LE: loop exit
PB: predicated region body
PF: predicated region fallthrough
CT: control target
= control target key end

     0   :  { %vm511_vm0 = vcmask 1043456   ;;  %vm530_vm1 = vcmask 256000   ;;  %s1246_s1 = inlined_call_operand.vmem [shape: f32[128,1568], index: 1, kind: input, shape index: {}]   ;;  %s1247_s0 = inlined_call_operand.vmem [shape: f32[3,128], index: 0, kind: input, shape index: {}]   ;;  %s1248_s2 = inlined_call_operand.vmem [shape: f32[3,1568], index: 2, kind: output, shape index: {}]  }
   0x1   :  { %v207_v0 = vld [vmem:[%s1246_s1 + $0x618] sm:$0xff]  ;;  %v194_v1 = vld [vmem:[%s1246_s1 + $0x5b0] sm:$0xff]  ;;  %v181_v2 = vld [vmem:[%s1246_s1 + $0x548] sm:$0xff] }
   0x2   :  { %220 = vmatpush.msra.mxu0 %v207_v0  ;;  %v208_v3 = vld [vmem:[%s1246_s1 + $0x620] sm:$0xff]  ;;  %v210_v5 = vld [vmem:[%s1246_s1 + $0x630] sm:$0xff]  ;;  %v195_v6 = vld [vmem:[%s1246_s1 + $0x5b8] sm:$0xff] }
   0x3   :  { %v168_v4 = vld [vmem:[%s1246_s1 + $0x4e0] sm:$0xff]  ;;  %240 = vmatpush.msra.mxu1 %v208_v3  ;;  %280 = vmatpush.msra.mxu3 %v210_v5  ;;  %v209_v7 = vld [vmem:[%s1246_s1 + $0x628] sm:$0xff]  ;;  %v155_v9 = vld [vmem:[%s1246_s1 + $0x478] sm:$0xff] }
   0x4   :  { %221 = vmatpush.msra.mxu0 %v194_v1  ;;  %v197_v8 = vld [vmem:[%s1246_s1 + $0x5c8] sm:$0xff]  ;;  %260 = vmatpush.msra.mxu2 %v209_v7  ;;  %v182_v10 = vld [vmem:[%s1246_s1 + $0x550] sm:$0xff]  ;;  %v196_v11 = vld [vmem:[%s1246_s1 + $0x5c0] sm:$0xff] }
   0x5   :  { %241 = vmatpush.msra.mxu1 %v195_v6  ;;  %281 = vmatpush.msra.mxu3 %v197_v8  ;;  %v184_v12 = vld [vmem:[%s1246_s1 + $0x560] sm:$0xff]  ;;  %v169_v13 = vld [vmem:[%s1246_s1 + $0x4e8] sm:$0xff]  ;;  %v142_v14 = vld [vmem:[%s1246_s1 + $0x410] sm:$0xff] }
   0x6   :  { %222 = vmatpush.msra.mxu0 %v181_v2  ;;  %261 = vmatpush.msra.mxu2 %v196_v11  ;;  %v183_v15 = vld [vmem:[%s1246_s1 + $0x558] sm:$0xff]  ;;  %v156_v17 = vld [vmem:[%s1246_s1 + $0x480] sm:$0xff]  ;;  %v170_v18 = vld [vmem:[%s1246_s1 + $0x4f0] sm:$0xff] }
   0x7   :  { %242 = vmatpush.msra.mxu1 %v182_v10  ;;  %v171_v16 = vld [vmem:[%s1246_s1 + $0x4f8] sm:$0xff]  ;;  %282 = vmatpush.msra.mxu3 %v184_v12  ;;  %v129_v19 = vld [vmem:[%s1246_s1 + $0x3a8] sm:$0xff]  ;;  %v158_v20 = vld [vmem:[%s1246_s1 + $0x490] sm:$0xff] }
   0x8   :  { %223 = vmatpush.msra.mxu0 %v168_v4  ;;  %262 = vmatpush.msra.mxu2 %v183_v15  ;;  %v143_v21 = vld [vmem:[%s1246_s1 + $0x418] sm:$0xff]  ;;  %v157_v22 = vld [vmem:[%s1246_s1 + $0x488] sm:$0xff]  ;;  %v116_v23 = vld [vmem:[%s1246_s1 + $0x340] sm:$0xff] }
   0x9   :  { %243 = vmatpush.msra.mxu1 %v169_v13  ;;  %283 = vmatpush.msra.mxu3 %v171_v16  ;;  %v145_v24 = vld [vmem:[%s1246_s1 + $0x428] sm:$0xff]  ;;  %v130_v25 = vld [vmem:[%s1246_s1 + $0x3b0] sm:$0xff]  ;;  %v144_v26 = vld [vmem:[%s1246_s1 + $0x420] sm:$0xff] }
   0xa   :  { %224 = vmatpush.msra.mxu0 %v155_v9  ;;  %263 = vmatpush.msra.mxu2 %v170_v18  ;;  %v103_v27 = vld [vmem:[%s1246_s1 + $0x2d8] sm:$0xff]  ;;  %v132_v28 = vld [vmem:[%s1246_s1 + $0x3c0] sm:$0xff]  ;;  %v117_v29 = vld [vmem:[%s1246_s1 + $0x348] sm:$0xff] }
   0xb   :  { %244 = vmatpush.msra.mxu1 %v156_v17  ;;  %284 = vmatpush.msra.mxu3 %v158_v20  ;;  %v131_v30 = vld [vmem:[%s1246_s1 + $0x3b8] sm:$0xff]  ;;  %v90_v31 = vld [vmem:[%s1246_s1 + $0x270] sm:$0xff]  ;;  %v104_v33 = vld [vmem:[%s1246_s1 + $0x2e0] sm:$0xff] }
   0xc   :  { %225 = vmatpush.msra.mxu0 %v142_v14  ;;  %264 = vmatpush.msra.mxu2 %v157_v22  ;;  %v119_v32 = vld [vmem:[%s1246_s1 + $0x358] sm:$0xff]  ;;  %v118_v34 = vld [vmem:[%s1246_s1 + $0x350] sm:$0xff]  ;;  %v77_v35 = vld [vmem:[%s1246_s1 + $0x208] sm:$0xff] }
   0xd   :  { %245 = vmatpush.msra.mxu1 %v143_v21  ;;  %285 = vmatpush.msra.mxu3 %v145_v24  ;;  %v106_v36 = vld [vmem:[%s1246_s1 + $0x2f0] sm:$0xff]  ;;  %v91_v37 = vld [vmem:[%s1246_s1 + $0x278] sm:$0xff]  ;;  %v105_v38 = vld [vmem:[%s1246_s1 + $0x2e8] sm:$0xff] }
   0xe   :  { %226 = vmatpush.msra.mxu0 %v129_v19  ;;  %265 = vmatpush.msra.mxu2 %v144_v26  ;;  %v64_v39 = vld [vmem:[%s1246_s1 + $0x1a0] sm:$0xff]  ;;  %v93_v40 = vld [vmem:[%s1246_s1 + $0x288] sm:$0xff]  ;;  %v78_v41 = vld [vmem:[%s1246_s1 + $0x210] sm:$0xff] }
   0xf   :  { %246 = vmatpush.msra.mxu1 %v130_v25  ;;  %286 = vmatpush.msra.mxu3 %v132_v28  ;;  %v92_v42 = vld [vmem:[%s1246_s1 + $0x280] sm:$0xff]  ;;  %v51_v43 = vld [vmem:[%s1246_s1 + $0x138] sm:$0xff]  ;;  %v65_v45 = vld [vmem:[%s1246_s1 + $0x1a8] sm:$0xff] }
  0x10   :  { %227 = vmatpush.msra.mxu0 %v116_v23  ;;  %266 = vmatpush.msra.mxu2 %v131_v30  ;;  %v80_v44 = vld [vmem:[%s1246_s1 + $0x220] sm:$0xff]  ;;  %v79_v46 = vld [vmem:[%s1246_s1 + $0x218] sm:$0xff]  ;;  %v38_v47 = vld [vmem:[%s1246_s1 + $0xd0] sm:$0xff] }
  0x11   :  { %247 = vmatpush.msra.mxu1 %v117_v29  ;;  %287 = vmatpush.msra.mxu3 %v119_v32  ;;  %v67_v48 = vld [vmem:[%s1246_s1 + $0x1b8] sm:$0xff]  ;;  %v52_v49 = vld [vmem:[%s1246_s1 + $0x140] sm:$0xff]  ;;  %v66_v50 = vld [vmem:[%s1246_s1 + $0x1b0] sm:$0xff] }
  0x12   :  { %228 = vmatpush.msra.mxu0 %v103_v27  ;;  %267 = vmatpush.msra.mxu2 %v118_v34  ;;  %v25_v51 = vld [vmem:[%s1246_s1 + $0x68] sm:$0xff]  ;;  %v54_v52 = vld [vmem:[%s1246_s1 + $0x150] sm:$0xff]  ;;  %v39_v53 = vld [vmem:[%s1246_s1 + $0xd8] sm:$0xff] }
  0x13   :  { %248 = vmatpush.msra.mxu1 %v104_v33  ;;  %288 = vmatpush.msra.mxu3 %v106_v36  ;;  %v53_v54 = vld [vmem:[%s1246_s1 + $0x148] sm:$0xff]  ;;  %v12_v55 = vld [vmem:[%s1246_s1] sm:$0xff]  ;;  %v211_v57 = vld [vmem:[%s1246_s1 + $0x638] sm:$0xff] }
  0x14   :  { %229 = vmatpush.msra.mxu0 %v90_v31  ;;  %268 = vmatpush.msra.mxu2 %v105_v38  ;;  %v41_v56 = vld [vmem:[%s1246_s1 + $0xe8] sm:$0xff]  ;;  %v26_v58 = vld [vmem:[%s1246_s1 + $0x70] sm:$0xff]  ;;  %v40_v59 = vld [vmem:[%s1246_s1 + $0xe0] sm:$0xff] }
  0x15   :  { %249 = vmatpush.msra.mxu1 %v91_v37  ;;  %289 = vmatpush.msra.mxu3 %v93_v40  ;;  %v28_v60 = vld [vmem:[%s1246_s1 + $0x80] sm:$0xff]  ;;  %v198_v61 = vld [vmem:[%s1246_s1 + $0x5d0] sm:$0xff]  ;;  %v13_v62 = vld [vmem:[%s1246_s1 + $0x8] sm:$0xff] }
  0x16   :  { %230 = vmatpush.msra.mxu0 %v77_v35  ;;  %269 = vmatpush.msra.mxu2 %v92_v42  ;;  %v27_v63 = vld [vmem:[%s1246_s1 + $0x78] sm:$0xff]  ;;  %v185_v1 = vld [vmem:[%s1246_s1 + $0x568] sm:$0xff]  ;;  %v212_v2 = vld [vmem:[%s1246_s1 + $0x640] sm:$0xff] }
  0x17   :  { %250 = vmatpush.msra.mxu1 %v78_v41  ;;  %290 = vmatpush.msra.mxu3 %v80_v44  ;;  %v15_v0 = vld [vmem:[%s1246_s1 + $0x18] sm:$0xff]  ;;  %v214_v3 = vld [vmem:[%s1246_s1 + $0x650] sm:$0xff]  ;;  %v172_v5 = vld [vmem:[%s1246_s1 + $0x500] sm:$0xff] }
  0x18   :  { %231 = vmatpush.msra.mxu0 %v64_v39  ;;  %270 = vmatpush.msra.mxu2 %v79_v46  ;;  %v14_v4 = vld [vmem:[%s1246_s1 + $0x10] sm:$0xff]  ;;  %v199_v6 = vld [vmem:[%s1246_s1 + $0x5d8] sm:$0xff]  ;;  %v213_v7 = vld [vmem:[%s1246_s1 + $0x648] sm:$0xff] }
  0x19   :  { %251 = vmatpush.msra.mxu1 %v65_v45  ;;  %291 = vmatpush.msra.mxu3 %v67_v48  ;;  %v201_v8 = vld [vmem:[%s1246_s1 + $0x5e8] sm:$0xff]  ;;  %v159_v9 = vld [vmem:[%s1246_s1 + $0x498] sm:$0xff]  ;;  %v186_v10 = vld [vmem:[%s1246_s1 + $0x570] sm:$0xff] }
  0x1a   :  { %232 = vmatpush.msra.mxu0 %v51_v43  ;;  %271 = vmatpush.msra.mxu2 %v66_v50  ;;  %v200_v11 = vld [vmem:[%s1246_s1 + $0x5e0] sm:$0xff]  ;;  %v146_v13 = vld [vmem:[%s1246_s1 + $0x430] sm:$0xff]  ;;  %v173_v14 = vld [vmem:[%s1246_s1 + $0x508] sm:$0xff] }
  0x1b   :  { %252 = vmatpush.msra.mxu1 %v52_v49  ;;  %292 = vmatpush.msra.mxu3 %v54_v52  ;;  %v188_v12 = vld [vmem:[%s1246_s1 + $0x580] sm:$0xff]  ;;  %v187_v15 = vld [vmem:[%s1246_s1 + $0x578] sm:$0xff]  ;;  %v133_v17 = vld [vmem:[%s1246_s1 + $0x3c8] sm:$0xff] }
  0x1c   :  { %233 = vmatpush.msra.mxu0 %v38_v47  ;;  %272 = vmatpush.msra.mxu2 %v53_v54  ;;  %v175_v16 = vld [vmem:[%s1246_s1 + $0x518] sm:$0xff]  ;;  %v826_v18 = vld [vmem:[%s1247_s0] sm:$0x7]  ;;  %v174_v20 = vld [vmem:[%s1246_s1 + $0x510] sm:$0xff] }
  0x1d   :  { %253 = vmatpush.msra.mxu1 %v39_v53  ;;  %293 = vmatpush.msra.mxu3 %v41_v56  ;;  %v160_v19 = vld [vmem:[%s1246_s1 + $0x4a0] sm:$0xff]  ;;  %v162_v22 = vld [vmem:[%s1246_s1 + $0x4b0] sm:$0xff]  ;;  %v147_v23 = vld [vmem:[%s1246_s1 + $0x438] sm:$0xff] }
  0x1e   :  { %234 = vmatpush.msra.mxu0 %v25_v51  ;;  %273 = vmatpush.msra.mxu2 %v40_v59  ;;  %v120_v21 = vld [vmem:[%s1246_s1 + $0x360] sm:$0xff]  ;;  %v107_v24 = vld [vmem:[%s1246_s1 + $0x2f8] sm:$0xff]  ;;  %v161_v25 = vld [vmem:[%s1246_s1 + $0x4a8] sm:$0xff] }
  0x1f   :  { %254 = vmatpush.msra.mxu1 %v26_v58  ;;  %294 = vmatpush.msra.mxu3 %v28_v60  ;;  %v149_v26 = vld [vmem:[%s1246_s1 + $0x448] sm:$0xff]  ;;  %v134_v27 = vld [vmem:[%s1246_s1 + $0x3d0] sm:$0xff]  ;;  %v148_v29 = vld [vmem:[%s1246_s1 + $0x440] sm:$0xff] }
  0x20   :  { %235 = vmatpush.msra.mxu0 %v12_v55  ;;  %274 = vmatpush.msra.mxu2 %v27_v63  ;;  %v94_v28 = vld [vmem:[%s1246_s1 + $0x290] sm:$0xff]  ;;  %v136_v30 = vld [vmem:[%s1246_s1 + $0x3e0] sm:$0xff]  ;;  %v121_v31 = vld [vmem:[%s1246_s1 + $0x368] sm:$0xff] }
  0x21   :  { %255 = vmatpush.msra.mxu1 %v13_v62  ;;  %295 = vmatpush.msra.mxu3 %v15_v0  ;;  %v81_v32 = vld [vmem:[%s1246_s1 + $0x228] sm:$0xff]  ;;  %v135_v33 = vld [vmem:[%s1246_s1 + $0x3d8] sm:$0xff]  ;;  %v108_v35 = vld [vmem:[%s1246_s1 + $0x300] sm:$0xff] }
  0x22   :  { %300 = vmatpush.msrb.mxu0 %v211_v57  ;;  %275 = vmatpush.msra.mxu2 %v14_v4  ;;  %v123_v34 = vld [vmem:[%s1246_s1 + $0x378] sm:$0xff]  ;;  %v68_v36 = vld [vmem:[%s1246_s1 + $0x1c0] sm:$0xff]  ;;  %v122_v37 = vld [vmem:[%s1246_s1 + $0x370] sm:$0xff] }
  0x23   :  { %320 = vmatpush.msrb.mxu1 %v212_v2  ;;  %360 = vmatpush.msrb.mxu3 %v214_v3  ;;  %v110_v38 = vld [vmem:[%s1246_s1 + $0x310] sm:$0xff]  ;;  %v95_v39 = vld [vmem:[%s1246_s1 + $0x298] sm:$0xff]  ;;  %v109_v41 = vld [vmem:[%s1246_s1 + $0x308] sm:$0xff] }
  0x24   :  { %301 = vmatpush.msrb.mxu0 %v198_v61  ;;  %340 = vmatpush.msrb.mxu2 %v213_v7  ;;  %v55_v40 = vld [vmem:[%s1246_s1 + $0x158] sm:$0xff]  ;;  %v97_v42 = vld [vmem:[%s1246_s1 + $0x2a8] sm:$0xff]  ;;  %v82_v43 = vld [vmem:[%s1246_s1 + $0x230] sm:$0xff] }
  0x25   :  { %321 = vmatpush.msrb.mxu1 %v199_v6  ;;  %361 = vmatpush.msrb.mxu3 %v201_v8  ;;  %v42_v44 = vld [vmem:[%s1246_s1 + $0xf0] sm:$0xff]  ;;  %v96_v45 = vld [vmem:[%s1246_s1 + $0x2a0] sm:$0xff]  ;;  %v69_v47 = vld [vmem:[%s1246_s1 + $0x1c8] sm:$0xff] }
  0x26   :  { %302 = vmatpush.msrb.mxu0 %v185_v1  ;;  %341 = vmatpush.msrb.mxu2 %v200_v11  ;;  %v84_v46 = vld [vmem:[%s1246_s1 + $0x240] sm:$0xff]  ;;  %v29_v48 = vld [vmem:[%s1246_s1 + $0x88] sm:$0xff]  ;;  %v83_v49 = vld [vmem:[%s1246_s1 + $0x238] sm:$0xff] }
  0x27   :  { %322 = vmatpush.msrb.mxu1 %v186_v10  ;;  %362 = vmatpush.msrb.mxu3 %v188_v12  ;;  %v71_v50 = vld [vmem:[%s1246_s1 + $0x1d8] sm:$0xff]  ;;  %v56_v51 = vld [vmem:[%s1246_s1 + $0x160] sm:$0xff]  ;;  %v70_v53 = vld [vmem:[%s1246_s1 + $0x1d0] sm:$0xff] }
  0x28   :  { %303 = vmatpush.msrb.mxu0 %v172_v5  ;;  %342 = vmatpush.msrb.mxu2 %v187_v15  ;;  %v16_v52 = vld [vmem:[%s1246_s1 + $0x20] sm:$0xff]  ;;  %v215_v54 = vld [vmem:[%s1246_s1 + $0x658] sm:$0xff]  ;;  %v58_v55 = vld [vmem:[%s1246_s1 + $0x170] sm:$0xff] }
  0x29   :  { %323 = vmatpush.msrb.mxu1 %v173_v14  ;;  %363 = vmatpush.msrb.mxu3 %v175_v16  ;;  %v43_v56 = vld [vmem:[%s1246_s1 + $0xf8] sm:$0xff]  ;;  %v57_v57 = vld [vmem:[%s1246_s1 + $0x168] sm:$0xff]  ;;  %v202_v58 = vld [vmem:[%s1246_s1 + $0x5f0] sm:$0xff] }
  0x2a   :  { %304 = vmatpush.msrb.mxu0 %v159_v9  ;;  %256 = vmatmul.f32.vlgmr.msra.gmra.mxu1 %v826_v18  ;;  %v45_v59 = vld [vmem:[%s1246_s1 + $0x108] sm:$0xff]  ;;  %v30_v60 = vld [vmem:[%s1246_s1 + $0x90] sm:$0xff]  ;;  %v44_v61 = vld [vmem:[%s1246_s1 + $0x100] sm:$0xff] }
  0x2b   :  { %324 = vmatpush.msrb.mxu1 %v160_v19  ;;  %343 = vmatpush.msrb.mxu2 %v174_v20  ;;  %v189_v62 = vld [vmem:[%s1246_s1 + $0x588] sm:$0xff]  ;;  %v32_v63 = vld [vmem:[%s1246_s1 + $0xa0] sm:$0xff]  ;;  %v31_v1 = vld [vmem:[%s1246_s1 + $0x98] sm:$0xff] }
  0x2c   :  { %305 = vmatpush.msrb.mxu0 %v146_v13  ;;  %364 = vmatpush.msrb.mxu3 %v162_v22  ;;  %v17_v0 = vld [vmem:[%s1246_s1 + $0x28] sm:$0xff]  ;;  %v176_v2 = vld [vmem:[%s1246_s1 + $0x520] sm:$0xff]  ;;  %v19_v3 = vld [vmem:[%s1246_s1 + $0x38] sm:$0xff] }
  0x2d   :  { %236 = vmatmul.f32.vlgmr.msra.gmra.mxu0 %v826_v18  ;;  %325 = vmatpush.msrb.mxu1 %v147_v23  ;;  %v216_v4 = vld [vmem:[%s1246_s1 + $0x660] sm:$0xff]  ;;  %v163_v5 = vld [vmem:[%s1246_s1 + $0x4b8] sm:$0xff]  ;;  %v218_v6 = vld [vmem:[%s1246_s1 + $0x670] sm:$0xff] }
  0x2e   :  { %306 = vmatpush.msrb.mxu0 %v133_v17  ;;  %344 = vmatpush.msrb.mxu2 %v161_v25  ;;  %v18_v7 = vld [vmem:[%s1246_s1 + $0x30] sm:$0xff]  ;;  %v203_v8 = vld [vmem:[%s1246_s1 + $0x5f8] sm:$0xff]  ;;  %v217_v10 = vld [vmem:[%s1246_s1 + $0x668] sm:$0xff] }
  0x2f   :  { %365 = vmatpush.msrb.mxu3 %v149_v26  ;;  %326 = vmatpush.msrb.mxu1 %v134_v27  ;;  %v150_v9 = vld [vmem:[%s1246_s1 + $0x450] sm:$0xff]  ;;  %v205_v11 = vld [vmem:[%s1246_s1 + $0x608] sm:$0xff]  ;;  %v204_v14 = vld [vmem:[%s1246_s1 + $0x600] sm:$0xff] }
  0x30   :  { %307 = vmatpush.msrb.mxu0 %v120_v21  ;;  %345 = vmatpush.msrb.mxu2 %v148_v29  ;;  %v137_v12 = vld [vmem:[%s1246_s1 + $0x3e8] sm:$0xff]  ;;  %v190_v13 = vld [vmem:[%s1246_s1 + $0x590] sm:$0xff]  ;;  %v192_v15 = vld [vmem:[%s1246_s1 + $0x5a0] sm:$0xff] }
  0x31   :  { %366 = vmatpush.msrb.mxu3 %v136_v30  ;;  %327 = vmatpush.msrb.mxu1 %v121_v31  ;;  %v124_v16 = vld [vmem:[%s1246_s1 + $0x380] sm:$0xff]  ;;  %v177_v17 = vld [vmem:[%s1246_s1 + $0x528] sm:$0xff]  ;;  %v191_v19 = vld [vmem:[%s1246_s1 + $0x598] sm:$0xff] }
  0x32   :  { %308 = vmatpush.msrb.mxu0 %v107_v24  ;;  %346 = vmatpush.msrb.mxu2 %v135_v33  ;;  %v179_v20 = vld [vmem:[%s1246_s1 + $0x538] sm:$0xff]  ;;  %v164_v22 = vld [vmem:[%s1246_s1 + $0x4c0] sm:$0xff]  ;;  %v178_v23 = vld [vmem:[%s1246_s1 + $0x530] sm:$0xff] }
  0x33   :  { %367 = vmatpush.msrb.mxu3 %v123_v34  ;;  %328 = vmatpush.msrb.mxu1 %v108_v35  ;;  %v111_v21 = vld [vmem:[%s1246_s1 + $0x318] sm:$0xff]  ;;  %v98_v24 = vld [vmem:[%s1246_s1 + $0x2b0] sm:$0xff]  ;;  %v85_v27 = vld [vmem:[%s1246_s1 + $0x248] sm:$0xff] }
  0x34   :  { %309 = vmatpush.msrb.mxu0 %v94_v28  ;;  %347 = vmatpush.msrb.mxu2 %v122_v37  ;;  %v166_v25 = vld [vmem:[%s1246_s1 + $0x4d0] sm:$0xff]  ;;  %v151_v26 = vld [vmem:[%s1246_s1 + $0x458] sm:$0xff]  ;;  %v165_v28 = vld [vmem:[%s1246_s1 + $0x4c8] sm:$0xff] }
  0x35   :  { %368 = vmatpush.msrb.mxu3 %v110_v38  ;;  %329 = vmatpush.msrb.mxu1 %v95_v39  ;;  %v153_v29 = vld [vmem:[%s1246_s1 + $0x468] sm:$0xff]  ;;  %v138_v30 = vld [vmem:[%s1246_s1 + $0x3f0] sm:$0xff]  ;;  %v72_v31 = vld [vmem:[%s1246_s1 + $0x1e0] sm:$0xff] }
  0x36   :  { %310 = vmatpush.msrb.mxu0 %v81_v32  ;;  %348 = vmatpush.msrb.mxu2 %v109_v41  ;;  %v152_v32 = vld [vmem:[%s1246_s1 + $0x460] sm:$0xff]  ;;  %v125_v34 = vld [vmem:[%s1246_s1 + $0x388] sm:$0xff]  ;;  %v59_v35 = vld [vmem:[%s1246_s1 + $0x178] sm:$0xff] }
  0x37   :  { %369 = vmatpush.msrb.mxu3 %v97_v42  ;;  %330 = vmatpush.msrb.mxu1 %v82_v43  ;;  %v140_v33 = vld [vmem:[%s1246_s1 + $0x400] sm:$0xff]  ;;  %v127_v37 = vld [vmem:[%s1246_s1 + $0x398] sm:$0xff]  ;;  %v46_v39 = vld [vmem:[%s1246_s1 + $0x110] sm:$0xff] }
  0x38   :  { %311 = vmatpush.msrb.mxu0 %v68_v36  ;;  %349 = vmatpush.msrb.mxu2 %v96_v45  ;;  %v139_v36 = vld [vmem:[%s1246_s1 + $0x3f8] sm:$0xff]  ;;  %v112_v38 = vld [vmem:[%s1246_s1 + $0x320] sm:$0xff]  ;;  %v114_v41 = vld [vmem:[%s1246_s1 + $0x330] sm:$0xff] }
  0x39   :  { %370 = vmatpush.msrb.mxu3 %v84_v46  ;;  %331 = vmatpush.msrb.mxu1 %v69_v47  ;;  %v99_v42 = vld [vmem:[%s1246_s1 + $0x2b8] sm:$0xff]  ;;  %v33_v43 = vld [vmem:[%s1246_s1 + $0xa8] sm:$0xff]  ;;  %v86_v46 = vld [vmem:[%s1246_s1 + $0x250] sm:$0xff] }
  0x3a   :  { %312 = vmatpush.msrb.mxu0 %v55_v40  ;;  %350 = vmatpush.msrb.mxu2 %v83_v49  ;;  %v126_v40 = vld [vmem:[%s1246_s1 + $0x390] sm:$0xff]  ;;  %v101_v45 = vld [vmem:[%s1246_s1 + $0x2c8] sm:$0xff]  ;;  %v20_v47 = vld [vmem:[%s1246_s1 + $0x40] sm:$0xff] }
  0x3b   :  { %371 = vmatpush.msrb.mxu3 %v71_v50  ;;  %332 = vmatpush.msrb.mxu1 %v56_v51  ;;  %v219_v49 = vld [vmem:[%s1246_s1 + $0x678] sm:$0xff]  ;;  %v88_v50 = vld [vmem:[%s1246_s1 + $0x260] sm:$0xff]  ;;  %v73_v51 = vld [vmem:[%s1246_s1 + $0x1e8] sm:$0xff] }
  0x3c   :  { %313 = vmatpush.msrb.mxu0 %v42_v44  ;;  %351 = vmatpush.msrb.mxu2 %v70_v53  ;;  %v113_v44 = vld [vmem:[%s1246_s1 + $0x328] sm:$0xff]  ;;  %v206_v53 = vld [vmem:[%s1246_s1 + $0x610] sm:$0xff] }
  0x3d   :  { %372 = vmatpush.msrb.mxu3 %v58_v55  ;;  %333 = vmatpush.msrb.mxu1 %v43_v56  ;;  %v60_v55 = vld [vmem:[%s1246_s1 + $0x180] sm:$0xff]  ;;  %v193_v56 = vld [vmem:[%s1246_s1 + $0x5a8] sm:$0xff] }
  0x3e   :  { %314 = vmatpush.msrb.mxu0 %v29_v48  ;;  %352 = vmatpush.msrb.mxu2 %v57_v57  ;;  %v100_v48 = vld [vmem:[%s1246_s1 + $0x2c0] sm:$0xff]  ;;  %v74_v57 = vld [vmem:[%s1246_s1 + $0x1f0] sm:$0xff] }
  0x3f   :  { %373 = vmatpush.msrb.mxu3 %v45_v59  ;;  %334 = vmatpush.msrb.mxu1 %v30_v60  ;;  %v180_v59 = vld [vmem:[%s1246_s1 + $0x540] sm:$0xff]  ;;  %v47_v60 = vld [vmem:[%s1246_s1 + $0x118] sm:$0xff] }
  0x40   :  { %315 = vmatpush.msrb.mxu0 %v16_v52  ;;  %353 = vmatpush.msrb.mxu2 %v44_v61  ;;  %v87_v52 = vld [vmem:[%s1246_s1 + $0x258] sm:$0xff]  ;;  %v61_v61 = vld [vmem:[%s1246_s1 + $0x188] sm:$0xff] }
  0x41   :  { %374 = vmatpush.msrb.mxu3 %v32_v63  ;;  %335 = vmatpush.msrb.mxu1 %v17_v0  ;;  %v167_v63 = vld [vmem:[%s1246_s1 + $0x4d8] sm:$0xff]  ;;  %v34_v0 = vld [vmem:[%s1246_s1 + $0xb0] sm:$0xff] }
  0x42   :  { %380 = vmatpush.msra.mxu0 %v215_v54  ;;  %354 = vmatpush.msrb.mxu2 %v31_v1  ;;  %v75_v54 = vld [vmem:[%s1246_s1 + $0x1f8] sm:$0xff]  ;;  %v48_v1 = vld [vmem:[%s1246_s1 + $0x120] sm:$0xff] }
  0x43   :  { %375 = vmatpush.msrb.mxu3 %v19_v3  ;;  %400 = vmatpush.msra.mxu1 %v216_v4  ;;  %v154_v3 = vld [vmem:[%s1246_s1 + $0x470] sm:$0xff]  ;;  %v21_v4 = vld [vmem:[%s1246_s1 + $0x48] sm:$0xff] }
  0x44   :  { %381 = vmatpush.msra.mxu0 %v202_v58  ;;  %296 = vmatmul.f32.vlgmr.msra.gmra.mxu3 %v826_v18  ;;  %v62_v58 = vld [vmem:[%s1246_s1 + $0x190] sm:$0xff] }
  0x45   :  { %440 = vmatpush.msra.mxu3 %v218_v6  ;;  %355 = vmatpush.msrb.mxu2 %v18_v7  ;;  %v141_v6 = vld [vmem:[%s1246_s1 + $0x408] sm:$0xff]  ;;  %v23_v7 = vld [vmem:[%s1246_s1 + $0x58] sm:$0xff] }
  0x46   :  { %382 = vmatpush.msra.mxu0 %v189_v62  ;;  %401 = vmatpush.msra.mxu1 %v203_v8  ;;  %v49_v62 = vld [vmem:[%s1246_s1 + $0x128] sm:$0xff]  ;;  %v128_v8 = vld [vmem:[%s1246_s1 + $0x3a0] sm:$0xff] }
  0x47   :  { %276 = vmatmul.f32.vlgmr.msra.gmra.mxu2 %v826_v18  ;;  %441 = vmatpush.msra.mxu3 %v205_v11  ;;  %v102_v11 = vld [vmem:[%s1246_s1 + $0x2d0] sm:$0xff] }
  0x48   :  { %383 = vmatpush.msra.mxu0 %v176_v2  ;;  %420 = vmatpush.msra.mxu2 %v217_v10  ;;  %v36_v2 = vld [vmem:[%s1246_s1 + $0xc0] sm:$0xff]  ;;  %v115_v10 = vld [vmem:[%s1246_s1 + $0x338] sm:$0xff] }
  0x49   :  { %402 = vmatpush.msra.mxu1 %v190_v13  ;;  %442 = vmatpush.msra.mxu3 %v192_v15  ;;  %v76_v13 = vld [vmem:[%s1246_s1 + $0x200] sm:$0xff]  ;;  %v50_v15 = vld [vmem:[%s1246_s1 + $0x130] sm:$0xff] }
  0x4a   :  { %384 = vmatpush.msra.mxu0 %v163_v5  ;;  %421 = vmatpush.msra.mxu2 %v204_v14  ;;  %v35_v5 = vld [vmem:[%s1246_s1 + $0xb8] sm:$0xff] }
  0x4b   :  { %403 = vmatpush.msra.mxu1 %v177_v17  ;;  %443 = vmatpush.msra.mxu3 %v179_v20  ;;  %v63_v14 = vld [vmem:[%s1246_s1 + $0x198] sm:$0xff]  ;;  %v24_v17 = vld [vmem:[%s1246_s1 + $0x60] sm:$0xff] }
  0x4c   :  { %385 = vmatpush.msra.mxu0 %v150_v9  ;;  %422 = vmatpush.msra.mxu2 %v191_v19  ;;  %v22_v9 = vld [vmem:[%s1246_s1 + $0x50] sm:$0xff] }
  0x4d   :  { %336 = vmatmul.f32.vlgmr.msrb.gmra.mxu1 %v826_v18  ;;  %444 = vmatpush.msra.mxu3 %v166_v25 }
  0x4e   :  { %386 = vmatpush.msra.mxu0 %v137_v12  ;;  %404 = vmatpush.msra.mxu1 %v164_v22  ;;  %v89_v12 = vld [vmem:[%s1246_s1 + $0x268] sm:$0xff] }
  0x4f   :  { %423 = vmatpush.msra.mxu2 %v178_v23  ;;  %316 = vmatmul.f32.vlgmr.msrb.gmra.mxu0 %v826_v18 }
  0x50   :  { %387 = vmatpush.msra.mxu0 %v124_v16  ;;  %405 = vmatpush.msra.mxu1 %v151_v26  ;;  %v37_v16 = vld [vmem:[%s1246_s1 + $0xc8] sm:$0xff] }
  0x51   :  { %424 = vmatpush.msra.mxu2 %v165_v28  ;;  %445 = vmatpush.msra.mxu3 %v153_v29 }
  0x52   :  { %388 = vmatpush.msra.mxu0 %v111_v21  ;;  %406 = vmatpush.msra.mxu1 %v138_v30 }
  0x53   :  { %425 = vmatpush.msra.mxu2 %v152_v32  ;;  %446 = vmatpush.msra.mxu3 %v140_v33 }
  0x54   :  { %389 = vmatpush.msra.mxu0 %v98_v24  ;;  %407 = vmatpush.msra.mxu1 %v125_v34 }
  0x55   :  { %426 = vmatpush.msra.mxu2 %v139_v36  ;;  %447 = vmatpush.msra.mxu3 %v127_v37 }
  0x56   :  { %390 = vmatpush.msra.mxu0 %v85_v27  ;;  %408 = vmatpush.msra.mxu1 %v112_v38 }
  0x57   :  { %427 = vmatpush.msra.mxu2 %v126_v40  ;;  %448 = vmatpush.msra.mxu3 %v114_v41 }
  0x58   :  { %391 = vmatpush.msra.mxu0 %v72_v31  ;;  %409 = vmatpush.msra.mxu1 %v99_v42 }
  0x59   :  { %428 = vmatpush.msra.mxu2 %v113_v44  ;;  %449 = vmatpush.msra.mxu3 %v101_v45 }
  0x5a   :  { %392 = vmatpush.msra.mxu0 %v59_v35  ;;  %410 = vmatpush.msra.mxu1 %v86_v46 }
  0x5b   :  { %429 = vmatpush.msra.mxu2 %v100_v48  ;;  %450 = vmatpush.msra.mxu3 %v88_v50 }
  0x5c   :  { %393 = vmatpush.msra.mxu0 %v46_v39  ;;  %411 = vmatpush.msra.mxu1 %v73_v51 }
  0x5d   :  { %430 = vmatpush.msra.mxu2 %v87_v52  ;;  %451 = vmatpush.msra.mxu3 %v75_v54 }
  0x5e   :  { %394 = vmatpush.msra.mxu0 %v33_v43  ;;  %376 = vmatmul.f32.vlgmr.msrb.gmra.mxu3 %v826_v18 }
  0x5f   :  { %412 = vmatpush.msra.mxu1 %v60_v55  ;;  %431 = vmatpush.msra.mxu2 %v74_v57 }
  0x60   :  { %395 = vmatpush.msra.mxu0 %v20_v47  ;;  %452 = vmatpush.msra.mxu3 %v62_v58 }
  0x61   :  { %356 = vmatmul.f32.vlgmr.msrb.gmra.mxu2 %v826_v18  ;;  %413 = vmatpush.msra.mxu1 %v47_v60 }
  0x62   :  { %460 = vmatpush.msrb.mxu0 %v219_v49  ;;  %432 = vmatpush.msra.mxu2 %v61_v61 }
  0x63   :  { %453 = vmatpush.msra.mxu3 %v49_v62  ;;  %414 = vmatpush.msra.mxu1 %v34_v0 }
  0x64   :  { %461 = vmatpush.msrb.mxu0 %v206_v53  ;;  %433 = vmatpush.msra.mxu2 %v48_v1 }
  0x65   :  { %454 = vmatpush.msra.mxu3 %v36_v2  ;;  %415 = vmatpush.msra.mxu1 %v21_v4 }
  0x66   :  { %462 = vmatpush.msrb.mxu0 %v193_v56  ;;  %416 = vmatmul.f32.vlgmr.msra.gmra.mxu1 %v826_v18 }
  0x67   :  { %434 = vmatpush.msra.mxu2 %v35_v5  ;;  %455 = vmatpush.msra.mxu3 %v23_v7 }
  0x68   :  { %463 = vmatpush.msrb.mxu0 %v180_v59  ;;  %456 = vmatmul.f32.vlgmr.msra.gmra.mxu3 %v826_v18 }
  0x69   :  { %396 = vmatmul.f32.vlgmr.msra.gmra.mxu0 %v826_v18  ;;  %435 = vmatpush.msra.mxu2 %v22_v9 }
  0x6a   :  { %464 = vmatpush.msrb.mxu0 %v167_v63  ;;  %436 = vmatmul.f32.vlgmr.msra.gmra.mxu2 %v826_v18 }
  0x6c   :  { %465 = vmatpush.msrb.mxu0 %v154_v3 }
  0x6e   :  { %466 = vmatpush.msrb.mxu0 %v141_v6 }
  0x70   :  { %467 = vmatpush.msrb.mxu0 %v128_v8 }
  0x72   :  { %468 = vmatpush.msrb.mxu0 %v115_v10 }
  0x74   :  { %469 = vmatpush.msrb.mxu0 %v102_v11 }
  0x76   :  { %470 = vmatpush.msrb.mxu0 %v89_v12 }
  0x78   :  { %471 = vmatpush.msrb.mxu0 %v76_v13 }
  0x7a   :  { %472 = vmatpush.msrb.mxu0 %v63_v14 }
  0x7c   :  { %473 = vmatpush.msrb.mxu0 %v50_v15 }
  0x7e   :  { %474 = vmatpush.msrb.mxu0 %v37_v16 }
  0x80   :  { %475 = vmatpush.msrb.mxu0 %v24_v17 }
  0x81   :  { %476 = vmatmul.f32.vlgmr.msrb.gmra.mxu0 %v826_v18 }
  0xa7   :  { %v257_v19 = vpop.f32.mrf.mxu1 }
  0xa8   :  { %536 = vtanh.f32 %v257_v19 }
  0xaa   :  { %v237_v20 = vpop.f32.mrf.mxu0 }
  0xab   :  { %538 = vtanh.f32 %v237_v20 }
  0xae   :  { %v537_v21 = vpop.eup %536 }
  0xaf   :  { %v505_v22 = vrot.slane %v537_v21, 4 }
  0xb1   :  { %v539_v23 = vpop.eup %538 }
  0xb2   :  { %v512_v24 = vsel %vm511_vm0, %v539_v23, %v505_v22 }
  0xb3   :  { %524 = vst [vmem:[%s1248_s2] sm:$0x77] %v512_v24 }
  0xc7   :  { %v297_v25 = vpop.f32.mrf.mxu3 }
  0xc8   :  { %540 = vtanh.f32 %v297_v25 }
  0xca   :  { %v337_v26 = vpop.f32.mrf.mxu1  ;;  %v277_v27 = vpop.f32.mrf.mxu2 }
  0xcb   :  { %542 = vtanh.f32 %v337_v26 }
  0xcc   :  { %544 = vtanh.f32 %v277_v27  ;;  %v317_v18 = vpop.f32.mrf.mxu0 }
  0xcd   :  { %546 = vtanh.f32 %v317_v18 }
  0xce   :  { %v541_v28 = vpop.eup %540 }
  0xcf   :  { %v506_v29 = vrot.slane %v541_v28, 4 }
  0xd1   :  { %v543_v30 = vpop.eup %542 }
  0xd2   :  { %v545_v31 = vpop.eup %544  ;;  %v507_v32 = vrot.slane %v543_v30, 4 }
  0xd3   :  { %v513_v33 = vsel %vm511_vm0, %v545_v31, %v506_v29  ;;  %v547_v34 = vpop.eup %546 }
  0xd4   :  { %525 = vst [vmem:[%s1248_s2 + $0x8] sm:$0x77] %v513_v33  ;;  %v514_v35 = vsel %vm511_vm0, %v547_v34, %v507_v32 }
  0xd5   :  { %526 = vst [vmem:[%s1248_s2 + $0x10] sm:$0x77] %v514_v35 }
  0xe1   :  { %v377_v36 = vpop.f32.mrf.mxu3 }
  0xe2   :  { %548 = vtanh.f32 %v377_v36 }
  0xe3   :  { %v417_v37 = vpop.f32.mrf.mxu1 }
  0xe4   :  { %v357_v38 = vpop.f32.mrf.mxu2  ;;  %550 = vtanh.f32 %v417_v37 }
  0xe5   :  { %552 = vtanh.f32 %v357_v38 }
  0xe6   :  { %v397_v39 = vpop.f32.mrf.mxu0 }
  0xe7   :  { %554 = vtanh.f32 %v397_v39 }
  0xe8   :  { %v549_v40 = vpop.eup %548 }
  0xe9   :  { %v508_v41 = vrot.slane %v549_v40, 4 }
  0xea   :  { %v551_v42 = vpop.eup %550 }
  0xeb   :  { %v553_v43 = vpop.eup %552  ;;  %v509_v44 = vrot.slane %v551_v42, 4  ;;  %v457_v45 = vpop.f32.mrf.mxu3 }
  0xec   :  { %v515_v47 = vsel %vm511_vm0, %v553_v43, %v508_v41  ;;  %556 = vtanh.f32 %v457_v45 }
  0xed   :  { %v555_v46 = vpop.eup %554  ;;  %527 = vst [vmem:[%s1248_s2 + $0x18] sm:$0x77] %v515_v47  ;;  %v437_v49 = vpop.f32.mrf.mxu2 }
  0xee   :  { %v516_v48 = vsel %vm511_vm0, %v555_v46, %v509_v44  ;;  %558 = vtanh.f32 %v437_v49 }
  0xef   :  { %528 = vst [vmem:[%s1248_s2 + $0x20] sm:$0x77] %v516_v48 }
  0xf2   :  { %v557_v50 = vpop.eup %556 }
  0xf3   :  { %v510_v51 = vrot.slane %v557_v50, 4 }
  0xf4   :  { %v559_v52 = vpop.eup %558 }
  0xf5   :  { %v517_v53 = vsel %vm511_vm0, %v559_v52, %v510_v51 }
  0xf6   :  { %529 = vst [vmem:[%s1248_s2 + $0x28] sm:$0x77] %v517_v53 }
  0xfe   :  { %v477_v54 = vpop.f32.mrf.mxu0 }
  0xff   :  { %560 = vtanh.f32 %v477_v54 }
 0x105   :  { %v561_v55 = vpop.eup %560 }
 0x106   :  { %531 = vst.msk [vmem:[%s1248_s2 + $0x30] sm:$0x7] %vm530_vm1, %v561_v55 }

</bundles_post_ra>
